<compile_context>
chip_gen: v7x
topology: tpu7x:2x2x1
jax: 0.10.0
libtpu: 0.0.40
codegen_flags: <defaults>
</compile_context>

<pallas_src>
import jax
import jax.numpy as jnp
from jax import lax
from jax.experimental import pallas as pl
from jax.experimental.pallas import tpu as pltpu

# Small, self-consistent shapes
B, T = 2, 8
HIDDEN = 32
INPUT_SIZE = 16        # must equal OUTPUT_SIZE (see note above)
OUTPUT_SIZE = 16
NUM_LAYERS = 3
H = HIDDEN
O_PAD = 128            # lane-dense padded fc output width

assert INPUT_SIZE == OUTPUT_SIZE, "CharLSTM requires input_size == output_size"


def char_lstm_kernel(ids_ref, wih0_ref, wih_rest_ref, whh_ref, b_ref,
                     fcw_ref, fcb_ref, h0_ref, c0_ref,
                     out_ref, hn_ref, cn_ref, seq_buf, xproj_buf):
    """Whole CharLSTM forward in one kernel invocation (everything fits in VMEM).

    ids_ref      : (T*B, 1) int32 token ids, time-major flattened
    wih0_ref     : (INPUT_SIZE, 4H)  layer-0 input weights, pre-transposed
    wih_rest_ref : (L-1, H, 4H)      layers 1.. input weights, pre-transposed
    whh_ref      : (L, H, 4H)        hidden weights, pre-transposed
    b_ref        : (L, 1, 4H)        b_ih + b_hh combined
    fcw_ref      : (H, O_PAD)        fc weight, pre-transposed + lane-padded
    fcb_ref      : (1, O_PAD)
    h0_ref,c0_ref: (L, B, H)
    out_ref      : (T*B, O_PAD)      time-major rows, lane-padded
    hn_ref,cn_ref: (L, B, H)
    seq_buf      : VMEM scratch (T*B, H)   current layer's output sequence (time-major)
    xproj_buf    : VMEM scratch (T*B, 4H)  precomputed input projections (time-major)
    """

    def run_layer(w_hh_t, h_init, c_init):
        """Per-timestep recurrence; input projection already in xproj_buf."""
        def step(t, carry):
            h, c = carry
            row = t * B
            gates = (xproj_buf[pl.ds(row, B), :]
                     + jnp.dot(h, w_hh_t, preferred_element_type=jnp.float32))
            # Full-vreg activations (gates is (B, 4H) = 128 lanes), then slice.
            sig = jax.nn.sigmoid(gates)
            th = jnp.tanh(gates)
            i = sig[:, 0 * H:1 * H]
            f = sig[:, 1 * H:2 * H]
            g = th[:, 2 * H:3 * H]
            o = sig[:, 3 * H:4 * H]
            c_new = f * c + i * g
            h_new = o * jnp.tanh(c_new)
            seq_buf[pl.ds(row, B), :] = h_new       # contiguous sublane store
            return (h_new, c_new)

        return lax.fori_loop(0, T, step, (h_init, c_init), unroll=True)

    # ---- layer 0: one-hot(token id) projection for ALL timesteps in one matmul ----
    iota = lax.broadcasted_iota(jnp.int32, (T * B, INPUT_SIZE), 1)
    onehot = (iota == ids_ref[...]).astype(jnp.float32)            # (T*B, I)
    xproj_buf[...] = (jnp.dot(onehot, wih0_ref[...],
                              preferred_element_type=jnp.float32)
                      + b_ref[0])                                  # (T*B, 4H)
    h, c = run_layer(whh_ref[0], h0_ref[0], c0_ref[0])
    hn_ref[0] = h
    cn_ref[0] = c

    # ---- layers 1..L-1: batched input projection, then recurrence ----
    for l in range(1, NUM_LAYERS):
        prev = seq_buf[...]                                        # (T*B, H) value
        xproj_buf[...] = (jnp.dot(prev, wih_rest_ref[l - 1],
                                  preferred_element_type=jnp.float32)
                          + b_ref[l])
        h, c = run_layer(whh_ref[l], h0_ref[l], c0_ref[l])
        hn_ref[l] = h
        cn_ref[l] = c

    # ---- fc head on the last layer's outputs (time-major rows, lane-dense store) ----
    feats = seq_buf[...]                                           # (T*B, H)
    out_ref[...] = (jnp.dot(feats, fcw_ref[...], preferred_element_type=jnp.float32)
                    + fcb_ref[...])


def prepare_params(w_ih, w_hh, b_ih, b_hh, fc_w, fc_b):
    """One-time parameter packing (hoisted out of the per-call path)."""
    wih0_t = w_ih[0].T                                             # (I, 4H)
    wih_rest_t = jnp.stack([w.T for w in w_ih[1:]], axis=0)        # (L-1, H, 4H)
    whh_t = jnp.stack([w.T for w in w_hh], axis=0)                 # (L, H, 4H)
    b = jnp.stack([(bi + bh).reshape(1, 4 * H)
                   for bi, bh in zip(b_ih, b_hh)], axis=0)         # (L, 1, 4H)
    fcw_pad = jnp.zeros((H, O_PAD), jnp.float32).at[:, :OUTPUT_SIZE].set(fc_w.T)
    fcb_pad = jnp.zeros((1, O_PAD), jnp.float32).at[:, :OUTPUT_SIZE].set(fc_b)
    return (wih0_t, wih_rest_t, whh_t, b, fcw_pad, fcb_pad)


@jax.jit
def char_lstm_forward(x, params, h0, c0):
    """Launch the Pallas kernel; returns (out (B*T, O), h_n, c_n)."""
    wih0_t, wih_rest_t, whh_t, b, fcw_pad, fcb_pad = params
    ids_tm = x.T.reshape(T * B, 1).astype(jnp.int32)               # time-major ids

    vmem = pl.BlockSpec(memory_space=pltpu.MemorySpace.VMEM)
    out_shapes = (
        jax.ShapeDtypeStruct((T * B, O_PAD), jnp.float32),
        jax.ShapeDtypeStruct((NUM_LAYERS, B, H), jnp.float32),
        jax.ShapeDtypeStruct((NUM_LAYERS, B, H), jnp.float32),
    )
    out_pad, h_n, c_n = pl.pallas_call(
        char_lstm_kernel,
        out_shape=out_shapes,
        in_specs=[vmem] * 9,
        out_specs=(vmem, vmem, vmem),
        scratch_shapes=[pltpu.VMEM((T * B, H), jnp.float32),
                        pltpu.VMEM((T * B, 4 * H), jnp.float32)],
    )(ids_tm, wih0_t, wih_rest_t, whh_t, b, fcw_pad, fcb_pad, h0, c0)

    # Un-pad lanes and permute time-major rows back to batch-major (B*T, O).
    out = (out_pad.reshape(T, B, O_PAD)[:, :, :OUTPUT_SIZE]
           .transpose(1, 0, 2).reshape(B * T, OUTPUT_SIZE))
    return out, h_n, c_n


def reference_forward(x, w_ih, w_hh, b_ih, b_hh, fc_w, fc_b, h0, c0):
    """Pure-JAX reference mirroring nn.LSTM (eval mode) + nn.Linear."""
    layer_in = jax.nn.one_hot(x, OUTPUT_SIZE, dtype=jnp.float32)   # (B, T, I)
    hs, cs = [], []
    for l in range(NUM_LAYERS):
        h, c = h0[l], c0[l]
        outs = []
        for t in range(T):
            gates = (layer_in[:, t, :] @ w_ih[l].T + b_ih[l]
                     + h @ w_hh[l].T + b_hh[l])
            i = jax.nn.sigmoid(gates[:, 0 * H:1 * H])
            f = jax.nn.sigmoid(gates[:, 1 * H:2 * H])
            g = jnp.tanh(gates[:, 2 * H:3 * H])
            o = jax.nn.sigmoid(gates[:, 3 * H:4 * H])
            c = f * c + i * g
            h = o * jnp.tanh(c)
            outs.append(h)
        layer_in = jnp.stack(outs, axis=1)
        hs.append(h)
        cs.append(c)
    out = layer_in.reshape(-1, H) @ fc_w.T + fc_b
    return out, jnp.stack(hs), jnp.stack(cs)


if __name__ == "__main__":
    key = jax.random.PRNGKey(0)
    keys = jax.random.split(key, 16)
    k_scale = 1.0 / jnp.sqrt(jnp.float32(H))

    def uni(k, shape):
        return jax.random.uniform(k, shape, jnp.float32, -k_scale, k_scale)

    # Deterministic LSTM parameters (PyTorch-style shapes, gate order i,f,g,o)
    w_ih, w_hh, b_ih, b_hh = [], [], [], []
    for l in range(NUM_LAYERS):
        in_dim = INPUT_SIZE if l == 0 else H
        w_ih.append(uni(keys[4 * l + 0], (4 * H, in_dim)))
        w_hh.append(uni(keys[4 * l + 1], (4 * H, H)))
        b_ih.append(uni(keys[4 * l + 2], (4 * H,)))
        b_hh.append(uni(keys[4 * l + 3], (4 * H,)))
    fc_w = uni(keys[12], (OUTPUT_SIZE, H))
    fc_b = uni(keys[13], (OUTPUT_SIZE,))

    # Example inputs: integer token ids + zero initial hidden state
    x = jax.random.randint(keys[14], (B, T), 0, OUTPUT_SIZE, dtype=jnp.int32)
    h0 = jnp.zeros((NUM_LAYERS, B, H), jnp.float32)
    c0 = jnp.zeros((NUM_LAYERS, B, H), jnp.float32)

    params = prepare_params(w_ih, w_hh, b_ih, b_hh, fc_w, fc_b)

    out, h_n, c_n = char_lstm_forward(x, params, h0, c0)
    jax.block_until_ready((out, h_n, c_n))

    ref_out, ref_h, ref_c = reference_forward(x, w_ih, w_hh, b_ih, b_hh,
                                              fc_w, fc_b, h0, c0)
    assert out.shape == (B * T, OUTPUT_SIZE)
    assert h_n.shape == (NUM_LAYERS, B, H) and c_n.shape == (NUM_LAYERS, B, H)
    assert jnp.allclose(out, ref_out, atol=1e-5, rtol=1e-5)
    assert jnp.allclose(h_n, ref_h, atol=1e-5, rtol=1e-5)
    assert jnp.allclose(c_n, ref_c, atol=1e-5, rtol=1e-5)

    print("KERNEL_OK")
</pallas_src>

<mosaic_0001>
module attributes {stable_mosaic.version = 11 : i64} {
  func.func @char_lstm_kernel(%arg0: memref<16x1xi32, #tpu.memory_space<vmem>>, %arg1: memref<16x128xf32, #tpu.memory_space<vmem>>, %arg2: memref<2x32x128xf32, #tpu.memory_space<vmem>>, %arg3: memref<3x32x128xf32, #tpu.memory_space<vmem>>, %arg4: memref<3x1x128xf32, #tpu.memory_space<vmem>>, %arg5: memref<32x128xf32, #tpu.memory_space<vmem>>, %arg6: memref<1x128xf32, #tpu.memory_space<vmem>>, %arg7: memref<3x2x32xf32, #tpu.memory_space<vmem>>, %arg8: memref<3x2x32xf32, #tpu.memory_space<vmem>>, %arg9: memref<16x128xf32, #tpu.memory_space<vmem>>, %arg10: memref<3x2x32xf32, #tpu.memory_space<vmem>>, %arg11: memref<3x2x32xf32, #tpu.memory_space<vmem>>, %arg12: memref<16x32xf32, #tpu.memory_space<vmem>>, %arg13: memref<16x128xf32, #tpu.memory_space<vmem>>) attributes {dimension_semantics = [], scalar_prefetch = 0 : i64, scratch_operands = 2 : i64, tpu.core_type = #tpu.core_type<tc>} {
    %0 = tpu.iota {dimensions = array<i32: 1>} : vector<16x16xi32>
    %c0 = arith.constant 0 : index
    %c0_0 = arith.constant 0 : index
    %1 = vector.load %arg0[%c0, %c0_0] : memref<16x1xi32, #tpu.memory_space<vmem>>, vector<16x1xi32>
    %2 = vector.broadcast %1 : vector<16x1xi32> to vector<16x16xi32>
    %3 = arith.cmpi eq, %0, %2 : vector<16x16xi32>
    %4 = arith.extui %3 : vector<16x16xi1> to vector<16x16xi32>
    %5 = arith.sitofp %4 : vector<16x16xi32> to vector<16x16xf32>
    %c0_1 = arith.constant 0 : index
    %c0_2 = arith.constant 0 : index
    %6 = vector.load %arg1[%c0_1, %c0_2] : memref<16x128xf32, #tpu.memory_space<vmem>>, vector<16x128xf32>
    %cst = arith.constant dense<0.000000e+00> : vector<16x128xf32>
    %7 = tpu.matmul %5, %6, %cst {dimension_numbers = #tpu.dot_dimension_numbers<[1], [0], [0], [1], [0, 0, 1, 1], [], []>} : vector<16x16xf32>, vector<16x128xf32>, vector<16x128xf32> -> vector<16x128xf32>
    %c0_3 = arith.constant 0 : index
    %c0_4 = arith.constant 0 : index
    %c0_5 = arith.constant 0 : index
    %8 = vector.load %arg4[%c0_3, %c0_4, %c0_5] : memref<3x1x128xf32, #tpu.memory_space<vmem>>, vector<1x1x128xf32>
    %9 = vector.shape_cast %8 : vector<1x1x128xf32> to vector<1x128xf32>
    %10 = vector.broadcast %9 : vector<1x128xf32> to vector<16x128xf32>
    %11 = arith.addf %7, %10 : vector<16x128xf32>
    %c0_6 = arith.constant 0 : index
    %c0_7 = arith.constant 0 : index
    %12 = vector.load %arg13[%c0_6, %c0_7] : memref<16x128xf32, #tpu.memory_space<vmem>>, vector<16x128xf32>
    tpu.vector_store %arg13[%c0_6, %c0_7], %11 {strides = array<i32>} : memref<16x128xf32, #tpu.memory_space<vmem>>, vector<16x128xf32>,
    %c0_8 = arith.constant 0 : index
    %c0_9 = arith.constant 0 : index
    %c0_10 = arith.constant 0 : index
    %13 = vector.load %arg3[%c0_8, %c0_9, %c0_10] : memref<3x32x128xf32, #tpu.memory_space<vmem>>, vector<1x32x128xf32>
    %14 = vector.shape_cast %13 : vector<1x32x128xf32> to vector<32x128xf32>
    %c0_11 = arith.constant 0 : index
    %c0_12 = arith.constant 0 : index
    %c0_13 = arith.constant 0 : index
    %15 = vector.load %arg7[%c0_11, %c0_12, %c0_13] : memref<3x2x32xf32, #tpu.memory_space<vmem>>, vector<1x2x32xf32>
    %16 = vector.shape_cast %15 : vector<1x2x32xf32> to vector<2x32xf32>
    %c0_14 = arith.constant 0 : index
    %c0_15 = arith.constant 0 : index
    %c0_16 = arith.constant 0 : index
    %17 = vector.load %arg8[%c0_14, %c0_15, %c0_16] : memref<3x2x32xf32, #tpu.memory_space<vmem>>, vector<1x2x32xf32>
    %18 = vector.shape_cast %17 : vector<1x2x32xf32> to vector<2x32xf32>
    %c0_i32 = arith.constant 0 : i32
    %c2_i32 = arith.constant 2 : i32
    %19 = arith.muli %c0_i32, %c2_i32 : i32
    %20 = arith.index_cast %19 : i32 to index
    %c0_17 = arith.constant 0 : index
    %21 = vector.load %arg13[%20, %c0_17] : memref<16x128xf32, #tpu.memory_space<vmem>>, vector<2x128xf32>
    %cst_18 = arith.constant dense<0.000000e+00> : vector<2x128xf32>
    %22 = tpu.matmul %16, %14, %cst_18 {dimension_numbers = #tpu.dot_dimension_numbers<[1], [0], [0], [1], [0, 0, 1, 1], [], []>} : vector<2x32xf32>, vector<32x128xf32>, vector<2x128xf32> -> vector<2x128xf32>
    %23 = arith.addf %21, %22 : vector<2x128xf32>
    %24 = arith.negf %23 : vector<2x128xf32>
    %25 = math.exp %24 : vector<2x128xf32>
    %cst_19 = arith.constant 1.000000e+00 : f32
    %26 = vector.broadcast %cst_19 : f32 to vector<2x128xf32>
    %27 = arith.addf %26, %25 : vector<2x128xf32>
    %28 = arith.divf %26, %27 : vector<2x128xf32>
    %29 = math.tanh %23 : vector<2x128xf32>
    %30 = vector.extract_strided_slice %28 {offsets = [0, 0], sizes = [2, 32], strides = [1, 1]} : vector<2x128xf32> to vector<2x32xf32>
    %31 = vector.extract_strided_slice %28 {offsets = [0, 32], sizes = [2, 32], strides = [1, 1]} : vector<2x128xf32> to vector<2x32xf32>
    %32 = vector.extract_strided_slice %29 {offsets = [0, 64], sizes = [2, 32], strides = [1, 1]} : vector<2x128xf32> to vector<2x32xf32>
    %33 = vector.extract_strided_slice %28 {offsets = [0, 96], sizes = [2, 32], strides = [1, 1]} : vector<2x128xf32> to vector<2x32xf32>
    %34 = arith.mulf %31, %18 : vector<2x32xf32>
    %35 = arith.mulf %30, %32 : vector<2x32xf32>
    %36 = arith.addf %34, %35 : vector<2x32xf32>
    %37 = math.tanh %36 : vector<2x32xf32>
    %38 = arith.mulf %33, %37 : vector<2x32xf32>
    %39 = arith.index_cast %19 : i32 to index
    %c0_20 = arith.constant 0 : index
    %40 = vector.load %arg12[%39, %c0_20] : memref<16x32xf32, #tpu.memory_space<vmem>>, vector<2x32xf32>
    tpu.vector_store %arg12[%39, %c0_20], %38 {strides = array<i32>} : memref<16x32xf32, #tpu.memory_space<vmem>>, vector<2x32xf32>,
    %c1_i32 = arith.constant 1 : i32
    %c2_i32_21 = arith.constant 2 : i32
    %41 = arith.muli %c1_i32, %c2_i32_21 : i32
    %42 = arith.index_cast %41 : i32 to index
    %c0_22 = arith.constant 0 : index
    %43 = vector.load %arg13[%42, %c0_22] : memref<16x128xf32, #tpu.memory_space<vmem>>, vector<2x128xf32>
    %cst_23 = arith.constant dense<0.000000e+00> : vector<2x128xf32>
    %44 = tpu.matmul %38, %14, %cst_23 {dimension_numbers = #tpu.dot_dimension_numbers<[1], [0], [0], [1], [0, 0, 1, 1], [], []>} : vector<2x32xf32>, vector<32x128xf32>, vector<2x128xf32> -> vector<2x128xf32>
    %45 = arith.addf %43, %44 : vector<2x128xf32>
    %46 = arith.negf %45 : vector<2x128xf32>
    %47 = math.exp %46 : vector<2x128xf32>
    %cst_24 = arith.constant 1.000000e+00 : f32
    %48 = vector.broadcast %cst_24 : f32 to vector<2x128xf32>
    %49 = arith.addf %48, %47 : vector<2x128xf32>
    %50 = arith.divf %48, %49 : vector<2x128xf32>
    %51 = math.tanh %45 : vector<2x128xf32>
    %52 = vector.extract_strided_slice %50 {offsets = [0, 0], sizes = [2, 32], strides = [1, 1]} : vector<2x128xf32> to vector<2x32xf32>
    %53 = vector.extract_strided_slice %50 {offsets = [0, 32], sizes = [2, 32], strides = [1, 1]} : vector<2x128xf32> to vector<2x32xf32>
    %54 = vector.extract_strided_slice %51 {offsets = [0, 64], sizes = [2, 32], strides = [1, 1]} : vector<2x128xf32> to vector<2x32xf32>
    %55 = vector.extract_strided_slice %50 {offsets = [0, 96], sizes = [2, 32], strides = [1, 1]} : vector<2x128xf32> to vector<2x32xf32>
    %56 = arith.mulf %53, %36 : vector<2x32xf32>
    %57 = arith.mulf %52, %54 : vector<2x32xf32>
    %58 = arith.addf %56, %57 : vector<2x32xf32>
    %59 = math.tanh %58 : vector<2x32xf32>
    %60 = arith.mulf %55, %59 : vector<2x32xf32>
    %61 = arith.index_cast %41 : i32 to index
    %c0_25 = arith.constant 0 : index
    %62 = vector.load %arg12[%61, %c0_25] : memref<16x32xf32, #tpu.memory_space<vmem>>, vector<2x32xf32>
    tpu.vector_store %arg12[%61, %c0_25], %60 {strides = array<i32>} : memref<16x32xf32, #tpu.memory_space<vmem>>, vector<2x32xf32>,
    %c2_i32_26 = arith.constant 2 : i32
    %c2_i32_27 = arith.constant 2 : i32
    %63 = arith.muli %c2_i32_26, %c2_i32_27 : i32
    %64 = arith.index_cast %63 : i32 to index
    %c0_28 = arith.constant 0 : index
    %65 = vector.load %arg13[%64, %c0_28] : memref<16x128xf32, #tpu.memory_space<vmem>>, vector<2x128xf32>
    %cst_29 = arith.constant dense<0.000000e+00> : vector<2x128xf32>
    %66 = tpu.matmul %60, %14, %cst_29 {dimension_numbers = #tpu.dot_dimension_numbers<[1], [0], [0], [1], [0, 0, 1, 1], [], []>} : vector<2x32xf32>, vector<32x128xf32>, vector<2x128xf32> -> vector<2x128xf32>
    %67 = arith.addf %65, %66 : vector<2x128xf32>
    %68 = arith.negf %67 : vector<2x128xf32>
    %69 = math.exp %68 : vector<2x128xf32>
    %cst_30 = arith.constant 1.000000e+00 : f32
    %70 = vector.broadcast %cst_30 : f32 to vector<2x128xf32>
    %71 = arith.addf %70, %69 : vector<2x128xf32>
    %72 = arith.divf %70, %71 : vector<2x128xf32>
    %73 = math.tanh %67 : vector<2x128xf32>
    %74 = vector.extract_strided_slice %72 {offsets = [0, 0], sizes = [2, 32], strides = [1, 1]} : vector<2x128xf32> to vector<2x32xf32>
    %75 = vector.extract_strided_slice %72 {offsets = [0, 32], sizes = [2, 32], strides = [1, 1]} : vector<2x128xf32> to vector<2x32xf32>
    %76 = vector.extract_strided_slice %73 {offsets = [0, 64], sizes = [2, 32], strides = [1, 1]} : vector<2x128xf32> to vector<2x32xf32>
    %77 = vector.extract_strided_slice %72 {offsets = [0, 96], sizes = [2, 32], strides = [1, 1]} : vector<2x128xf32> to vector<2x32xf32>
    %78 = arith.mulf %75, %58 : vector<2x32xf32>
    %79 = arith.mulf %74, %76 : vector<2x32xf32>
    %80 = arith.addf %78, %79 : vector<2x32xf32>
    %81 = math.tanh %80 : vector<2x32xf32>
    %82 = arith.mulf %77, %81 : vector<2x32xf32>
    %83 = arith.index_cast %63 : i32 to index
    %c0_31 = arith.constant 0 : index
    %84 = vector.load %arg12[%83, %c0_31] : memref<16x32xf32, #tpu.memory_space<vmem>>, vector<2x32xf32>
    tpu.vector_store %arg12[%83, %c0_31], %82 {strides = array<i32>} : memref<16x32xf32, #tpu.memory_space<vmem>>, vector<2x32xf32>,
    %c3_i32 = arith.constant 3 : i32
    %c2_i32_32 = arith.constant 2 : i32
    %85 = arith.muli %c3_i32, %c2_i32_32 : i32
    %86 = arith.index_cast %85 : i32 to index
    %c0_33 = arith.constant 0 : index
    %87 = vector.load %arg13[%86, %c0_33] : memref<16x128xf32, #tpu.memory_space<vmem>>, vector<2x128xf32>
    %cst_34 = arith.constant dense<0.000000e+00> : vector<2x128xf32>
    %88 = tpu.matmul %82, %14, %cst_34 {dimension_numbers = #tpu.dot_dimension_numbers<[1], [0], [0], [1], [0, 0, 1, 1], [], []>} : vector<2x32xf32>, vector<32x128xf32>, vector<2x128xf32> -> vector<2x128xf32>
    %89 = arith.addf %87, %88 : vector<2x128xf32>
    %90 = arith.negf %89 : vector<2x128xf32>
    %91 = math.exp %90 : vector<2x128xf32>
    %cst_35 = arith.constant 1.000000e+00 : f32
    %92 = vector.broadcast %cst_35 : f32 to vector<2x128xf32>
    %93 = arith.addf %92, %91 : vector<2x128xf32>
    %94 = arith.divf %92, %93 : vector<2x128xf32>
    %95 = math.tanh %89 : vector<2x128xf32>
    %96 = vector.extract_strided_slice %94 {offsets = [0, 0], sizes = [2, 32], strides = [1, 1]} : vector<2x128xf32> to vector<2x32xf32>
    %97 = vector.extract_strided_slice %94 {offsets = [0, 32], sizes = [2, 32], strides = [1, 1]} : vector<2x128xf32> to vector<2x32xf32>
    %98 = vector.extract_strided_slice %95 {offsets = [0, 64], sizes = [2, 32], strides = [1, 1]} : vector<2x128xf32> to vector<2x32xf32>
    %99 = vector.extract_strided_slice %94 {offsets = [0, 96], sizes = [2, 32], strides = [1, 1]} : vector<2x128xf32> to vector<2x32xf32>
    %100 = arith.mulf %97, %80 : vector<2x32xf32>
    %101 = arith.mulf %96, %98 : vector<2x32xf32>
    %102 = arith.addf %100, %101 : vector<2x32xf32>
    %103 = math.tanh %102 : vector<2x32xf32>
    %104 = arith.mulf %99, %103 : vector<2x32xf32>
    %105 = arith.index_cast %85 : i32 to index
    %c0_36 = arith.constant 0 : index
    %106 = vector.load %arg12[%105, %c0_36] : memref<16x32xf32, #tpu.memory_space<vmem>>, vector<2x32xf32>
    tpu.vector_store %arg12[%105, %c0_36], %104 {strides = array<i32>} : memref<16x32xf32, #tpu.memory_space<vmem>>, vector<2x32xf32>,
    %c4_i32 = arith.constant 4 : i32
    %c2_i32_37 = arith.constant 2 : i32
    %107 = arith.muli %c4_i32, %c2_i32_37 : i32
    %108 = arith.index_cast %107 : i32 to index
    %c0_38 = arith.constant 0 : index
    %109 = vector.load %arg13[%108, %c0_38] : memref<16x128xf32, #tpu.memory_space<vmem>>, vector<2x128xf32>
    %cst_39 = arith.constant dense<0.000000e+00> : vector<2x128xf32>
    %110 = tpu.matmul %104, %14, %cst_39 {dimension_numbers = #tpu.dot_dimension_numbers<[1], [0], [0], [1], [0, 0, 1, 1], [], []>} : vector<2x32xf32>, vector<32x128xf32>, vector<2x128xf32> -> vector<2x128xf32>
    %111 = arith.addf %109, %110 : vector<2x128xf32>
    %112 = arith.negf %111 : vector<2x128xf32>
    %113 = math.exp %112 : vector<2x128xf32>
    %cst_40 = arith.constant 1.000000e+00 : f32
    %114 = vector.broadcast %cst_40 : f32 to vector<2x128xf32>
    %115 = arith.addf %114, %113 : vector<2x128xf32>
    %116 = arith.divf %114, %115 : vector<2x128xf32>
    %117 = math.tanh %111 : vector<2x128xf32>
    %118 = vector.extract_strided_slice %116 {offsets = [0, 0], sizes = [2, 32], strides = [1, 1]} : vector<2x128xf32> to vector<2x32xf32>
    %119 = vector.extract_strided_slice %116 {offsets = [0, 32], sizes = [2, 32], strides = [1, 1]} : vector<2x128xf32> to vector<2x32xf32>
    %120 = vector.extract_strided_slice %117 {offsets = [0, 64], sizes = [2, 32], strides = [1, 1]} : vector<2x128xf32> to vector<2x32xf32>
    %121 = vector.extract_strided_slice %116 {offsets = [0, 96], sizes = [2, 32], strides = [1, 1]} : vector<2x128xf32> to vector<2x32xf32>
    %122 = arith.mulf %119, %102 : vector<2x32xf32>
    %123 = arith.mulf %118, %120 : vector<2x32xf32>
    %124 = arith.addf %122, %123 : vector<2x32xf32>
    %125 = math.tanh %124 : vector<2x32xf32>
    %126 = arith.mulf %121, %125 : vector<2x32xf32>
    %127 = arith.index_cast %107 : i32 to index
    %c0_41 = arith.constant 0 : index
    %128 = vector.load %arg12[%127, %c0_41] : memref<16x32xf32, #tpu.memory_space<vmem>>, vector<2x32xf32>
    tpu.vector_store %arg12[%127, %c0_41], %126 {strides = array<i32>} : memref<16x32xf32, #tpu.memory_space<vmem>>, vector<2x32xf32>,
    %c5_i32 = arith.constant 5 : i32
    %c2_i32_42 = arith.constant 2 : i32
    %129 = arith.muli %c5_i32, %c2_i32_42 : i32
    %130 = arith.index_cast %129 : i32 to index
    %c0_43 = arith.constant 0 : index
    %131 = vector.load %arg13[%130, %c0_43] : memref<16x128xf32, #tpu.memory_space<vmem>>, vector<2x128xf32>
    %cst_44 = arith.constant dense<0.000000e+00> : vector<2x128xf32>
    %132 = tpu.matmul %126, %14, %cst_44 {dimension_numbers = #tpu.dot_dimension_numbers<[1], [0], [0], [1], [0, 0, 1, 1], [], []>} : vector<2x32xf32>, vector<32x128xf32>, vector<2x128xf32> -> vector<2x128xf32>
    %133 = arith.addf %131, %132 : vector<2x128xf32>
    %134 = arith.negf %133 : vector<2x128xf32>
    %135 = math.exp %134 : vector<2x128xf32>
    %cst_45 = arith.constant 1.000000e+00 : f32
    %136 = vector.broadcast %cst_45 : f32 to vector<2x128xf32>
    %137 = arith.addf %136, %135 : vector<2x128xf32>
    %138 = arith.divf %136, %137 : vector<2x128xf32>
    %139 = math.tanh %133 : vector<2x128xf32>
    %140 = vector.extract_strided_slice %138 {offsets = [0, 0], sizes = [2, 32], strides = [1, 1]} : vector<2x128xf32> to vector<2x32xf32>
    %141 = vector.extract_strided_slice %138 {offsets = [0, 32], sizes = [2, 32], strides = [1, 1]} : vector<2x128xf32> to vector<2x32xf32>
    %142 = vector.extract_strided_slice %139 {offsets = [0, 64], sizes = [2, 32], strides = [1, 1]} : vector<2x128xf32> to vector<2x32xf32>
    %143 = vector.extract_strided_slice %138 {offsets = [0, 96], sizes = [2, 32], strides = [1, 1]} : vector<2x128xf32> to vector<2x32xf32>
    %144 = arith.mulf %141, %124 : vector<2x32xf32>
    %145 = arith.mulf %140, %142 : vector<2x32xf32>
    %146 = arith.addf %144, %145 : vector<2x32xf32>
    %147 = math.tanh %146 : vector<2x32xf32>
    %148 = arith.mulf %143, %147 : vector<2x32xf32>
    %149 = arith.index_cast %129 : i32 to index
    %c0_46 = arith.constant 0 : index
    %150 = vector.load %arg12[%149, %c0_46] : memref<16x32xf32, #tpu.memory_space<vmem>>, vector<2x32xf32>
    tpu.vector_store %arg12[%149, %c0_46], %148 {strides = array<i32>} : memref<16x32xf32, #tpu.memory_space<vmem>>, vector<2x32xf32>,
    %c6_i32 = arith.constant 6 : i32
    %c2_i32_47 = arith.constant 2 : i32
    %151 = arith.muli %c6_i32, %c2_i32_47 : i32
    %152 = arith.index_cast %151 : i32 to index
    %c0_48 = arith.constant 0 : index
    %153 = vector.load %arg13[%152, %c0_48] : memref<16x128xf32, #tpu.memory_space<vmem>>, vector<2x128xf32>
    %cst_49 = arith.constant dense<0.000000e+00> : vector<2x128xf32>
    %154 = tpu.matmul %148, %14, %cst_49 {dimension_numbers = #tpu.dot_dimension_numbers<[1], [0], [0], [1], [0, 0, 1, 1], [], []>} : vector<2x32xf32>, vector<32x128xf32>, vector<2x128xf32> -> vector<2x128xf32>
    %155 = arith.addf %153, %154 : vector<2x128xf32>
    %156 = arith.negf %155 : vector<2x128xf32>
    %157 = math.exp %156 : vector<2x128xf32>
    %cst_50 = arith.constant 1.000000e+00 : f32
    %158 = vector.broadcast %cst_50 : f32 to vector<2x128xf32>
    %159 = arith.addf %158, %157 : vector<2x128xf32>
    %160 = arith.divf %158, %159 : vector<2x128xf32>
    %161 = math.tanh %155 : vector<2x128xf32>
    %162 = vector.extract_strided_slice %160 {offsets = [0, 0], sizes = [2, 32], strides = [1, 1]} : vector<2x128xf32> to vector<2x32xf32>
    %163 = vector.extract_strided_slice %160 {offsets = [0, 32], sizes = [2, 32], strides = [1, 1]} : vector<2x128xf32> to vector<2x32xf32>
    %164 = vector.extract_strided_slice %161 {offsets = [0, 64], sizes = [2, 32], strides = [1, 1]} : vector<2x128xf32> to vector<2x32xf32>
    %165 = vector.extract_strided_slice %160 {offsets = [0, 96], sizes = [2, 32], strides = [1, 1]} : vector<2x128xf32> to vector<2x32xf32>
    %166 = arith.mulf %163, %146 : vector<2x32xf32>
    %167 = arith.mulf %162, %164 : vector<2x32xf32>
    %168 = arith.addf %166, %167 : vector<2x32xf32>
    %169 = math.tanh %168 : vector<2x32xf32>
    %170 = arith.mulf %165, %169 : vector<2x32xf32>
    %171 = arith.index_cast %151 : i32 to index
    %c0_51 = arith.constant 0 : index
    %172 = vector.load %arg12[%171, %c0_51] : memref<16x32xf32, #tpu.memory_space<vmem>>, vector<2x32xf32>
    tpu.vector_store %arg12[%171, %c0_51], %170 {strides = array<i32>} : memref<16x32xf32, #tpu.memory_space<vmem>>, vector<2x32xf32>,
    %c7_i32 = arith.constant 7 : i32
    %c2_i32_52 = arith.constant 2 : i32
    %173 = arith.muli %c7_i32, %c2_i32_52 : i32
    %174 = arith.index_cast %173 : i32 to index
    %c0_53 = arith.constant 0 : index
    %175 = vector.load %arg13[%174, %c0_53] : memref<16x128xf32, #tpu.memory_space<vmem>>, vector<2x128xf32>
    %cst_54 = arith.constant dense<0.000000e+00> : vector<2x128xf32>
    %176 = tpu.matmul %170, %14, %cst_54 {dimension_numbers = #tpu.dot_dimension_numbers<[1], [0], [0], [1], [0, 0, 1, 1], [], []>} : vector<2x32xf32>, vector<32x128xf32>, vector<2x128xf32> -> vector<2x128xf32>
    %177 = arith.addf %175, %176 : vector<2x128xf32>
    %178 = arith.negf %177 : vector<2x128xf32>
    %179 = math.exp %178 : vector<2x128xf32>
    %cst_55 = arith.constant 1.000000e+00 : f32
    %180 = vector.broadcast %cst_55 : f32 to vector<2x128xf32>
    %181 = arith.addf %180, %179 : vector<2x128xf32>
    %182 = arith.divf %180, %181 : vector<2x128xf32>
    %183 = math.tanh %177 : vector<2x128xf32>
    %184 = vector.extract_strided_slice %182 {offsets = [0, 0], sizes = [2, 32], strides = [1, 1]} : vector<2x128xf32> to vector<2x32xf32>
    %185 = vector.extract_strided_slice %182 {offsets = [0, 32], sizes = [2, 32], strides = [1, 1]} : vector<2x128xf32> to vector<2x32xf32>
    %186 = vector.extract_strided_slice %183 {offsets = [0, 64], sizes = [2, 32], strides = [1, 1]} : vector<2x128xf32> to vector<2x32xf32>
    %187 = vector.extract_strided_slice %182 {offsets = [0, 96], sizes = [2, 32], strides = [1, 1]} : vector<2x128xf32> to vector<2x32xf32>
    %188 = arith.mulf %185, %168 : vector<2x32xf32>
    %189 = arith.mulf %184, %186 : vector<2x32xf32>
    %190 = arith.addf %188, %189 : vector<2x32xf32>
    %191 = math.tanh %190 : vector<2x32xf32>
    %192 = arith.mulf %187, %191 : vector<2x32xf32>
    %193 = arith.index_cast %173 : i32 to index
    %c0_56 = arith.constant 0 : index
    %194 = vector.load %arg12[%193, %c0_56] : memref<16x32xf32, #tpu.memory_space<vmem>>, vector<2x32xf32>
    tpu.vector_store %arg12[%193, %c0_56], %192 {strides = array<i32>} : memref<16x32xf32, #tpu.memory_space<vmem>>, vector<2x32xf32>,
    %c8_i32 = arith.constant 8 : i32
    %c0_57 = arith.constant 0 : index
    %c0_58 = arith.constant 0 : index
    %c0_59 = arith.constant 0 : index
    %195 = vector.load %arg10[%c0_57, %c0_58, %c0_59] : memref<3x2x32xf32, #tpu.memory_space<vmem>>, vector<1x2x32xf32>
    %196 = vector.shape_cast %195 : vector<1x2x32xf32> to vector<2x32xf32>
    %197 = vector.shape_cast %192 : vector<2x32xf32> to vector<1x2x32xf32>
    tpu.vector_store %arg10[%c0_57, %c0_58, %c0_59], %197 {strides = array<i32>} : memref<3x2x32xf32, #tpu.memory_space<vmem>>, vector<1x2x32xf32>,
    %c0_60 = arith.constant 0 : index
    %c0_61 = arith.constant 0 : index
    %c0_62 = arith.constant 0 : index
    %198 = vector.load %arg11[%c0_60, %c0_61, %c0_62] : memref<3x2x32xf32, #tpu.memory_space<vmem>>, vector<1x2x32xf32>
    %199 = vector.shape_cast %198 : vector<1x2x32xf32> to vector<2x32xf32>
    %200 = vector.shape_cast %190 : vector<2x32xf32> to vector<1x2x32xf32>
    tpu.vector_store %arg11[%c0_60, %c0_61, %c0_62], %200 {strides = array<i32>} : memref<3x2x32xf32, #tpu.memory_space<vmem>>, vector<1x2x32xf32>,
    %c0_63 = arith.constant 0 : index
    %c0_64 = arith.constant 0 : index
    %201 = vector.load %arg12[%c0_63, %c0_64] : memref<16x32xf32, #tpu.memory_space<vmem>>, vector<16x32xf32>
    %c0_65 = arith.constant 0 : index
    %c0_66 = arith.constant 0 : index
    %c0_67 = arith.constant 0 : index
    %202 = vector.load %arg2[%c0_65, %c0_66, %c0_67] : memref<2x32x128xf32, #tpu.memory_space<vmem>>, vector<1x32x128xf32>
    %203 = vector.shape_cast %202 : vector<1x32x128xf32> to vector<32x128xf32>
    %cst_68 = arith.constant dense<0.000000e+00> : vector<16x128xf32>
    %204 = tpu.matmul %201, %203, %cst_68 {dimension_numbers = #tpu.dot_dimension_numbers<[1], [0], [0], [1], [0, 0, 1, 1], [], []>} : vector<16x32xf32>, vector<32x128xf32>, vector<16x128xf32> -> vector<16x128xf32>
    %c1 = arith.constant 1 : index
    %c0_69 = arith.constant 0 : index
    %c0_70 = arith.constant 0 : index
    %205 = vector.load %arg4[%c1, %c0_69, %c0_70] : memref<3x1x128xf32, #tpu.memory_space<vmem>>, vector<1x1x128xf32>
    %206 = vector.shape_cast %205 : vector<1x1x128xf32> to vector<1x128xf32>
    %207 = vector.broadcast %206 : vector<1x128xf32> to vector<16x128xf32>
    %208 = arith.addf %204, %207 : vector<16x128xf32>
    %c0_71 = arith.constant 0 : index
    %c0_72 = arith.constant 0 : index
    %209 = vector.load %arg13[%c0_71, %c0_72] : memref<16x128xf32, #tpu.memory_space<vmem>>, vector<16x128xf32>
    tpu.vector_store %arg13[%c0_71, %c0_72], %208 {strides = array<i32>} : memref<16x128xf32, #tpu.memory_space<vmem>>, vector<16x128xf32>,
    %c1_73 = arith.constant 1 : index
    %c0_74 = arith.constant 0 : index
    %c0_75 = arith.constant 0 : index
    %210 = vector.load %arg3[%c1_73, %c0_74, %c0_75] : memref<3x32x128xf32, #tpu.memory_space<vmem>>, vector<1x32x128xf32>
    %211 = vector.shape_cast %210 : vector<1x32x128xf32> to vector<32x128xf32>
    %c1_76 = arith.constant 1 : index
    %c0_77 = arith.constant 0 : index
    %c0_78 = arith.constant 0 : index
    %212 = vector.load %arg7[%c1_76, %c0_77, %c0_78] : memref<3x2x32xf32, #tpu.memory_space<vmem>>, vector<1x2x32xf32>
    %213 = vector.shape_cast %212 : vector<1x2x32xf32> to vector<2x32xf32>
    %c1_79 = arith.constant 1 : index
    %c0_80 = arith.constant 0 : index
    %c0_81 = arith.constant 0 : index
    %214 = vector.load %arg8[%c1_79, %c0_80, %c0_81] : memref<3x2x32xf32, #tpu.memory_space<vmem>>, vector<1x2x32xf32>
    %215 = vector.shape_cast %214 : vector<1x2x32xf32> to vector<2x32xf32>
    %c0_i32_82 = arith.constant 0 : i32
    %c2_i32_83 = arith.constant 2 : i32
    %216 = arith.muli %c0_i32_82, %c2_i32_83 : i32
    %217 = arith.index_cast %216 : i32 to index
    %c0_84 = arith.constant 0 : index
    %218 = vector.load %arg13[%217, %c0_84] : memref<16x128xf32, #tpu.memory_space<vmem>>, vector<2x128xf32>
    %cst_85 = arith.constant dense<0.000000e+00> : vector<2x128xf32>
    %219 = tpu.matmul %213, %211, %cst_85 {dimension_numbers = #tpu.dot_dimension_numbers<[1], [0], [0], [1], [0, 0, 1, 1], [], []>} : vector<2x32xf32>, vector<32x128xf32>, vector<2x128xf32> -> vector<2x128xf32>
    %220 = arith.addf %218, %219 : vector<2x128xf32>
    %221 = arith.negf %220 : vector<2x128xf32>
    %222 = math.exp %221 : vector<2x128xf32>
    %cst_86 = arith.constant 1.000000e+00 : f32
    %223 = vector.broadcast %cst_86 : f32 to vector<2x128xf32>
    %224 = arith.addf %223, %222 : vector<2x128xf32>
    %225 = arith.divf %223, %224 : vector<2x128xf32>
    %226 = math.tanh %220 : vector<2x128xf32>
    %227 = vector.extract_strided_slice %225 {offsets = [0, 0], sizes = [2, 32], strides = [1, 1]} : vector<2x128xf32> to vector<2x32xf32>
    %228 = vector.extract_strided_slice %225 {offsets = [0, 32], sizes = [2, 32], strides = [1, 1]} : vector<2x128xf32> to vector<2x32xf32>
    %229 = vector.extract_strided_slice %226 {offsets = [0, 64], sizes = [2, 32], strides = [1, 1]} : vector<2x128xf32> to vector<2x32xf32>
    %230 = vector.extract_strided_slice %225 {offsets = [0, 96], sizes = [2, 32], strides = [1, 1]} : vector<2x128xf32> to vector<2x32xf32>
    %231 = arith.mulf %228, %215 : vector<2x32xf32>
    %232 = arith.mulf %227, %229 : vector<2x32xf32>
    %233 = arith.addf %231, %232 : vector<2x32xf32>
    %234 = math.tanh %233 : vector<2x32xf32>
    %235 = arith.mulf %230, %234 : vector<2x32xf32>
    %236 = arith.index_cast %216 : i32 to index
    %c0_87 = arith.constant 0 : index
    %237 = vector.load %arg12[%236, %c0_87] : memref<16x32xf32, #tpu.memory_space<vmem>>, vector<2x32xf32>
    tpu.vector_store %arg12[%236, %c0_87], %235 {strides = array<i32>} : memref<16x32xf32, #tpu.memory_space<vmem>>, vector<2x32xf32>,
    %c1_i32_88 = arith.constant 1 : i32
    %c2_i32_89 = arith.constant 2 : i32
    %238 = arith.muli %c1_i32_88, %c2_i32_89 : i32
    %239 = arith.index_cast %238 : i32 to index
    %c0_90 = arith.constant 0 : index
    %240 = vector.load %arg13[%239, %c0_90] : memref<16x128xf32, #tpu.memory_space<vmem>>, vector<2x128xf32>
    %cst_91 = arith.constant dense<0.000000e+00> : vector<2x128xf32>
    %241 = tpu.matmul %235, %211, %cst_91 {dimension_numbers = #tpu.dot_dimension_numbers<[1], [0], [0], [1], [0, 0, 1, 1], [], []>} : vector<2x32xf32>, vector<32x128xf32>, vector<2x128xf32> -> vector<2x128xf32>
    %242 = arith.addf %240, %241 : vector<2x128xf32>
    %243 = arith.negf %242 : vector<2x128xf32>
    %244 = math.exp %243 : vector<2x128xf32>
    %cst_92 = arith.constant 1.000000e+00 : f32
    %245 = vector.broadcast %cst_92 : f32 to vector<2x128xf32>
    %246 = arith.addf %245, %244 : vector<2x128xf32>
    %247 = arith.divf %245, %246 : vector<2x128xf32>
    %248 = math.tanh %242 : vector<2x128xf32>
    %249 = vector.extract_strided_slice %247 {offsets = [0, 0], sizes = [2, 32], strides = [1, 1]} : vector<2x128xf32> to vector<2x32xf32>
    %250 = vector.extract_strided_slice %247 {offsets = [0, 32], sizes = [2, 32], strides = [1, 1]} : vector<2x128xf32> to vector<2x32xf32>
    %251 = vector.extract_strided_slice %248 {offsets = [0, 64], sizes = [2, 32], strides = [1, 1]} : vector<2x128xf32> to vector<2x32xf32>
    %252 = vector.extract_strided_slice %247 {offsets = [0, 96], sizes = [2, 32], strides = [1, 1]} : vector<2x128xf32> to vector<2x32xf32>
    %253 = arith.mulf %250, %233 : vector<2x32xf32>
    %254 = arith.mulf %249, %251 : vector<2x32xf32>
    %255 = arith.addf %253, %254 : vector<2x32xf32>
    %256 = math.tanh %255 : vector<2x32xf32>
    %257 = arith.mulf %252, %256 : vector<2x32xf32>
    %258 = arith.index_cast %238 : i32 to index
    %c0_93 = arith.constant 0 : index
    %259 = vector.load %arg12[%258, %c0_93] : memref<16x32xf32, #tpu.memory_space<vmem>>, vector<2x32xf32>
    tpu.vector_store %arg12[%258, %c0_93], %257 {strides = array<i32>} : memref<16x32xf32, #tpu.memory_space<vmem>>, vector<2x32xf32>,
    %c2_i32_94 = arith.constant 2 : i32
    %c2_i32_95 = arith.constant 2 : i32
    %260 = arith.muli %c2_i32_94, %c2_i32_95 : i32
    %261 = arith.index_cast %260 : i32 to index
    %c0_96 = arith.constant 0 : index
    %262 = vector.load %arg13[%261, %c0_96] : memref<16x128xf32, #tpu.memory_space<vmem>>, vector<2x128xf32>
    %cst_97 = arith.constant dense<0.000000e+00> : vector<2x128xf32>
    %263 = tpu.matmul %257, %211, %cst_97 {dimension_numbers = #tpu.dot_dimension_numbers<[1], [0], [0], [1], [0, 0, 1, 1], [], []>} : vector<2x32xf32>, vector<32x128xf32>, vector<2x128xf32> -> vector<2x128xf32>
    %264 = arith.addf %262, %263 : vector<2x128xf32>
    %265 = arith.negf %264 : vector<2x128xf32>
    %266 = math.exp %265 : vector<2x128xf32>
    %cst_98 = arith.constant 1.000000e+00 : f32
    %267 = vector.broadcast %cst_98 : f32 to vector<2x128xf32>
    %268 = arith.addf %267, %266 : vector<2x128xf32>
    %269 = arith.divf %267, %268 : vector<2x128xf32>
    %270 = math.tanh %264 : vector<2x128xf32>
    %271 = vector.extract_strided_slice %269 {offsets = [0, 0], sizes = [2, 32], strides = [1, 1]} : vector<2x128xf32> to vector<2x32xf32>
    %272 = vector.extract_strided_slice %269 {offsets = [0, 32], sizes = [2, 32], strides = [1, 1]} : vector<2x128xf32> to vector<2x32xf32>
    %273 = vector.extract_strided_slice %270 {offsets = [0, 64], sizes = [2, 32], strides = [1, 1]} : vector<2x128xf32> to vector<2x32xf32>
    %274 = vector.extract_strided_slice %269 {offsets = [0, 96], sizes = [2, 32], strides = [1, 1]} : vector<2x128xf32> to vector<2x32xf32>
    %275 = arith.mulf %272, %255 : vector<2x32xf32>
    %276 = arith.mulf %271, %273 : vector<2x32xf32>
    %277 = arith.addf %275, %276 : vector<2x32xf32>
    %278 = math.tanh %277 : vector<2x32xf32>
    %279 = arith.mulf %274, %278 : vector<2x32xf32>
    %280 = arith.index_cast %260 : i32 to index
    %c0_99 = arith.constant 0 : index
    %281 = vector.load %arg12[%280, %c0_99] : memref<16x32xf32, #tpu.memory_space<vmem>>, vector<2x32xf32>
    tpu.vector_store %arg12[%280, %c0_99], %279 {strides = array<i32>} : memref<16x32xf32, #tpu.memory_space<vmem>>, vector<2x32xf32>,
    %c3_i32_100 = arith.constant 3 : i32
    %c2_i32_101 = arith.constant 2 : i32
    %282 = arith.muli %c3_i32_100, %c2_i32_101 : i32
    %283 = arith.index_cast %282 : i32 to index
    %c0_102 = arith.constant 0 : index
    %284 = vector.load %arg13[%283, %c0_102] : memref<16x128xf32, #tpu.memory_space<vmem>>, vector<2x128xf32>
    %cst_103 = arith.constant dense<0.000000e+00> : vector<2x128xf32>
    %285 = tpu.matmul %279, %211, %cst_103 {dimension_numbers = #tpu.dot_dimension_numbers<[1], [0], [0], [1], [0, 0, 1, 1], [], []>} : vector<2x32xf32>, vector<32x128xf32>, vector<2x128xf32> -> vector<2x128xf32>
    %286 = arith.addf %284, %285 : vector<2x128xf32>
    %287 = arith.negf %286 : vector<2x128xf32>
    %288 = math.exp %287 : vector<2x128xf32>
    %cst_104 = arith.constant 1.000000e+00 : f32
    %289 = vector.broadcast %cst_104 : f32 to vector<2x128xf32>
    %290 = arith.addf %289, %288 : vector<2x128xf32>
    %291 = arith.divf %289, %290 : vector<2x128xf32>
    %292 = math.tanh %286 : vector<2x128xf32>
    %293 = vector.extract_strided_slice %291 {offsets = [0, 0], sizes = [2, 32], strides = [1, 1]} : vector<2x128xf32> to vector<2x32xf32>
    %294 = vector.extract_strided_slice %291 {offsets = [0, 32], sizes = [2, 32], strides = [1, 1]} : vector<2x128xf32> to vector<2x32xf32>
    %295 = vector.extract_strided_slice %292 {offsets = [0, 64], sizes = [2, 32], strides = [1, 1]} : vector<2x128xf32> to vector<2x32xf32>
    %296 = vector.extract_strided_slice %291 {offsets = [0, 96], sizes = [2, 32], strides = [1, 1]} : vector<2x128xf32> to vector<2x32xf32>
    %297 = arith.mulf %294, %277 : vector<2x32xf32>
    %298 = arith.mulf %293, %295 : vector<2x32xf32>
    %299 = arith.addf %297, %298 : vector<2x32xf32>
    %300 = math.tanh %299 : vector<2x32xf32>
    %301 = arith.mulf %296, %300 : vector<2x32xf32>
    %302 = arith.index_cast %282 : i32 to index
    %c0_105 = arith.constant 0 : index
    %303 = vector.load %arg12[%302, %c0_105] : memref<16x32xf32, #tpu.memory_space<vmem>>, vector<2x32xf32>
    tpu.vector_store %arg12[%302, %c0_105], %301 {strides = array<i32>} : memref<16x32xf32, #tpu.memory_space<vmem>>, vector<2x32xf32>,
    %c4_i32_106 = arith.constant 4 : i32
    %c2_i32_107 = arith.constant 2 : i32
    %304 = arith.muli %c4_i32_106, %c2_i32_107 : i32
    %305 = arith.index_cast %304 : i32 to index
    %c0_108 = arith.constant 0 : index
    %306 = vector.load %arg13[%305, %c0_108] : memref<16x128xf32, #tpu.memory_space<vmem>>, vector<2x128xf32>
    %cst_109 = arith.constant dense<0.000000e+00> : vector<2x128xf32>
    %307 = tpu.matmul %301, %211, %cst_109 {dimension_numbers = #tpu.dot_dimension_numbers<[1], [0], [0], [1], [0, 0, 1, 1], [], []>} : vector<2x32xf32>, vector<32x128xf32>, vector<2x128xf32> -> vector<2x128xf32>
    %308 = arith.addf %306, %307 : vector<2x128xf32>
    %309 = arith.negf %308 : vector<2x128xf32>
    %310 = math.exp %309 : vector<2x128xf32>
    %cst_110 = arith.constant 1.000000e+00 : f32
    %311 = vector.broadcast %cst_110 : f32 to vector<2x128xf32>
    %312 = arith.addf %311, %310 : vector<2x128xf32>
    %313 = arith.divf %311, %312 : vector<2x128xf32>
    %314 = math.tanh %308 : vector<2x128xf32>
    %315 = vector.extract_strided_slice %313 {offsets = [0, 0], sizes = [2, 32], strides = [1, 1]} : vector<2x128xf32> to vector<2x32xf32>
    %316 = vector.extract_strided_slice %313 {offsets = [0, 32], sizes = [2, 32], strides = [1, 1]} : vector<2x128xf32> to vector<2x32xf32>
    %317 = vector.extract_strided_slice %314 {offsets = [0, 64], sizes = [2, 32], strides = [1, 1]} : vector<2x128xf32> to vector<2x32xf32>
    %318 = vector.extract_strided_slice %313 {offsets = [0, 96], sizes = [2, 32], strides = [1, 1]} : vector<2x128xf32> to vector<2x32xf32>
    %319 = arith.mulf %316, %299 : vector<2x32xf32>
    %320 = arith.mulf %315, %317 : vector<2x32xf32>
    %321 = arith.addf %319, %320 : vector<2x32xf32>
    %322 = math.tanh %321 : vector<2x32xf32>
    %323 = arith.mulf %318, %322 : vector<2x32xf32>
    %324 = arith.index_cast %304 : i32 to index
    %c0_111 = arith.constant 0 : index
    %325 = vector.load %arg12[%324, %c0_111] : memref<16x32xf32, #tpu.memory_space<vmem>>, vector<2x32xf32>
    tpu.vector_store %arg12[%324, %c0_111], %323 {strides = array<i32>} : memref<16x32xf32, #tpu.memory_space<vmem>>, vector<2x32xf32>,
    %c5_i32_112 = arith.constant 5 : i32
    %c2_i32_113 = arith.constant 2 : i32
    %326 = arith.muli %c5_i32_112, %c2_i32_113 : i32
    %327 = arith.index_cast %326 : i32 to index
    %c0_114 = arith.constant 0 : index
    %328 = vector.load %arg13[%327, %c0_114] : memref<16x128xf32, #tpu.memory_space<vmem>>, vector<2x128xf32>
    %cst_115 = arith.constant dense<0.000000e+00> : vector<2x128xf32>
    %329 = tpu.matmul %323, %211, %cst_115 {dimension_numbers = #tpu.dot_dimension_numbers<[1], [0], [0], [1], [0, 0, 1, 1], [], []>} : vector<2x32xf32>, vector<32x128xf32>, vector<2x128xf32> -> vector<2x128xf32>
    %330 = arith.addf %328, %329 : vector<2x128xf32>
    %331 = arith.negf %330 : vector<2x128xf32>
    %332 = math.exp %331 : vector<2x128xf32>
    %cst_116 = arith.constant 1.000000e+00 : f32
    %333 = vector.broadcast %cst_116 : f32 to vector<2x128xf32>
    %334 = arith.addf %333, %332 : vector<2x128xf32>
    %335 = arith.divf %333, %334 : vector<2x128xf32>
    %336 = math.tanh %330 : vector<2x128xf32>
    %337 = vector.extract_strided_slice %335 {offsets = [0, 0], sizes = [2, 32], strides = [1, 1]} : vector<2x128xf32> to vector<2x32xf32>
    %338 = vector.extract_strided_slice %335 {offsets = [0, 32], sizes = [2, 32], strides = [1, 1]} : vector<2x128xf32> to vector<2x32xf32>
    %339 = vector.extract_strided_slice %336 {offsets = [0, 64], sizes = [2, 32], strides = [1, 1]} : vector<2x128xf32> to vector<2x32xf32>
    %340 = vector.extract_strided_slice %335 {offsets = [0, 96], sizes = [2, 32], strides = [1, 1]} : vector<2x128xf32> to vector<2x32xf32>
    %341 = arith.mulf %338, %321 : vector<2x32xf32>
    %342 = arith.mulf %337, %339 : vector<2x32xf32>
    %343 = arith.addf %341, %342 : vector<2x32xf32>
    %344 = math.tanh %343 : vector<2x32xf32>
    %345 = arith.mulf %340, %344 : vector<2x32xf32>
    %346 = arith.index_cast %326 : i32 to index
    %c0_117 = arith.constant 0 : index
    %347 = vector.load %arg12[%346, %c0_117] : memref<16x32xf32, #tpu.memory_space<vmem>>, vector<2x32xf32>
    tpu.vector_store %arg12[%346, %c0_117], %345 {strides = array<i32>} : memref<16x32xf32, #tpu.memory_space<vmem>>, vector<2x32xf32>,
    %c6_i32_118 = arith.constant 6 : i32
    %c2_i32_119 = arith.constant 2 : i32
    %348 = arith.muli %c6_i32_118, %c2_i32_119 : i32
    %349 = arith.index_cast %348 : i32 to index
    %c0_120 = arith.constant 0 : index
    %350 = vector.load %arg13[%349, %c0_120] : memref<16x128xf32, #tpu.memory_space<vmem>>, vector<2x128xf32>
    %cst_121 = arith.constant dense<0.000000e+00> : vector<2x128xf32>
    %351 = tpu.matmul %345, %211, %cst_121 {dimension_numbers = #tpu.dot_dimension_numbers<[1], [0], [0], [1], [0, 0, 1, 1], [], []>} : vector<2x32xf32>, vector<32x128xf32>, vector<2x128xf32> -> vector<2x128xf32>
    %352 = arith.addf %350, %351 : vector<2x128xf32>
    %353 = arith.negf %352 : vector<2x128xf32>
    %354 = math.exp %353 : vector<2x128xf32>
    %cst_122 = arith.constant 1.000000e+00 : f32
    %355 = vector.broadcast %cst_122 : f32 to vector<2x128xf32>
    %356 = arith.addf %355, %354 : vector<2x128xf32>
    %357 = arith.divf %355, %356 : vector<2x128xf32>
    %358 = math.tanh %352 : vector<2x128xf32>
    %359 = vector.extract_strided_slice %357 {offsets = [0, 0], sizes = [2, 32], strides = [1, 1]} : vector<2x128xf32> to vector<2x32xf32>
    %360 = vector.extract_strided_slice %357 {offsets = [0, 32], sizes = [2, 32], strides = [1, 1]} : vector<2x128xf32> to vector<2x32xf32>
    %361 = vector.extract_strided_slice %358 {offsets = [0, 64], sizes = [2, 32], strides = [1, 1]} : vector<2x128xf32> to vector<2x32xf32>
    %362 = vector.extract_strided_slice %357 {offsets = [0, 96], sizes = [2, 32], strides = [1, 1]} : vector<2x128xf32> to vector<2x32xf32>
    %363 = arith.mulf %360, %343 : vector<2x32xf32>
    %364 = arith.mulf %359, %361 : vector<2x32xf32>
    %365 = arith.addf %363, %364 : vector<2x32xf32>
    %366 = math.tanh %365 : vector<2x32xf32>
    %367 = arith.mulf %362, %366 : vector<2x32xf32>
    %368 = arith.index_cast %348 : i32 to index
    %c0_123 = arith.constant 0 : index
    %369 = vector.load %arg12[%368, %c0_123] : memref<16x32xf32, #tpu.memory_space<vmem>>, vector<2x32xf32>
    tpu.vector_store %arg12[%368, %c0_123], %367 {strides = array<i32>} : memref<16x32xf32, #tpu.memory_space<vmem>>, vector<2x32xf32>,
    %c7_i32_124 = arith.constant 7 : i32
    %c2_i32_125 = arith.constant 2 : i32
    %370 = arith.muli %c7_i32_124, %c2_i32_125 : i32
    %371 = arith.index_cast %370 : i32 to index
    %c0_126 = arith.constant 0 : index
    %372 = vector.load %arg13[%371, %c0_126] : memref<16x128xf32, #tpu.memory_space<vmem>>, vector<2x128xf32>
    %cst_127 = arith.constant dense<0.000000e+00> : vector<2x128xf32>
    %373 = tpu.matmul %367, %211, %cst_127 {dimension_numbers = #tpu.dot_dimension_numbers<[1], [0], [0], [1], [0, 0, 1, 1], [], []>} : vector<2x32xf32>, vector<32x128xf32>, vector<2x128xf32> -> vector<2x128xf32>
    %374 = arith.addf %372, %373 : vector<2x128xf32>
    %375 = arith.negf %374 : vector<2x128xf32>
    %376 = math.exp %375 : vector<2x128xf32>
    %cst_128 = arith.constant 1.000000e+00 : f32
    %377 = vector.broadcast %cst_128 : f32 to vector<2x128xf32>
    %378 = arith.addf %377, %376 : vector<2x128xf32>
    %379 = arith.divf %377, %378 : vector<2x128xf32>
    %380 = math.tanh %374 : vector<2x128xf32>
    %381 = vector.extract_strided_slice %379 {offsets = [0, 0], sizes = [2, 32], strides = [1, 1]} : vector<2x128xf32> to vector<2x32xf32>
    %382 = vector.extract_strided_slice %379 {offsets = [0, 32], sizes = [2, 32], strides = [1, 1]} : vector<2x128xf32> to vector<2x32xf32>
    %383 = vector.extract_strided_slice %380 {offsets = [0, 64], sizes = [2, 32], strides = [1, 1]} : vector<2x128xf32> to vector<2x32xf32>
    %384 = vector.extract_strided_slice %379 {offsets = [0, 96], sizes = [2, 32], strides = [1, 1]} : vector<2x128xf32> to vector<2x32xf32>
    %385 = arith.mulf %382, %365 : vector<2x32xf32>
    %386 = arith.mulf %381, %383 : vector<2x32xf32>
    %387 = arith.addf %385, %386 : vector<2x32xf32>
    %388 = math.tanh %387 : vector<2x32xf32>
    %389 = arith.mulf %384, %388 : vector<2x32xf32>
    %390 = arith.index_cast %370 : i32 to index
    %c0_129 = arith.constant 0 : index
    %391 = vector.load %arg12[%390, %c0_129] : memref<16x32xf32, #tpu.memory_space<vmem>>, vector<2x32xf32>
    tpu.vector_store %arg12[%390, %c0_129], %389 {strides = array<i32>} : memref<16x32xf32, #tpu.memory_space<vmem>>, vector<2x32xf32>,
    %c8_i32_130 = arith.constant 8 : i32
    %c1_131 = arith.constant 1 : index
    %c0_132 = arith.constant 0 : index
    %c0_133 = arith.constant 0 : index
    %392 = vector.load %arg10[%c1_131, %c0_132, %c0_133] : memref<3x2x32xf32, #tpu.memory_space<vmem>>, vector<1x2x32xf32>
    %393 = vector.shape_cast %392 : vector<1x2x32xf32> to vector<2x32xf32>
    %394 = vector.shape_cast %389 : vector<2x32xf32> to vector<1x2x32xf32>
    tpu.vector_store %arg10[%c1_131, %c0_132, %c0_133], %394 {strides = array<i32>} : memref<3x2x32xf32, #tpu.memory_space<vmem>>, vector<1x2x32xf32>,
    %c1_134 = arith.constant 1 : index
    %c0_135 = arith.constant 0 : index
    %c0_136 = arith.constant 0 : index
    %395 = vector.load %arg11[%c1_134, %c0_135, %c0_136] : memref<3x2x32xf32, #tpu.memory_space<vmem>>, vector<1x2x32xf32>
    %396 = vector.shape_cast %395 : vector<1x2x32xf32> to vector<2x32xf32>
    %397 = vector.shape_cast %387 : vector<2x32xf32> to vector<1x2x32xf32>
    tpu.vector_store %arg11[%c1_134, %c0_135, %c0_136], %397 {strides = array<i32>} : memref<3x2x32xf32, #tpu.memory_space<vmem>>, vector<1x2x32xf32>,
    %c0_137 = arith.constant 0 : index
    %c0_138 = arith.constant 0 : index
    %398 = vector.load %arg12[%c0_137, %c0_138] : memref<16x32xf32, #tpu.memory_space<vmem>>, vector<16x32xf32>
    %c1_139 = arith.constant 1 : index
    %c0_140 = arith.constant 0 : index
    %c0_141 = arith.constant 0 : index
    %399 = vector.load %arg2[%c1_139, %c0_140, %c0_141] : memref<2x32x128xf32, #tpu.memory_space<vmem>>, vector<1x32x128xf32>
    %400 = vector.shape_cast %399 : vector<1x32x128xf32> to vector<32x128xf32>
    %cst_142 = arith.constant dense<0.000000e+00> : vector<16x128xf32>
    %401 = tpu.matmul %398, %400, %cst_142 {dimension_numbers = #tpu.dot_dimension_numbers<[1], [0], [0], [1], [0, 0, 1, 1], [], []>} : vector<16x32xf32>, vector<32x128xf32>, vector<16x128xf32> -> vector<16x128xf32>
    %c2 = arith.constant 2 : index
    %c0_143 = arith.constant 0 : index
    %c0_144 = arith.constant 0 : index
    %402 = vector.load %arg4[%c2, %c0_143, %c0_144] : memref<3x1x128xf32, #tpu.memory_space<vmem>>, vector<1x1x128xf32>
    %403 = vector.shape_cast %402 : vector<1x1x128xf32> to vector<1x128xf32>
    %404 = vector.broadcast %403 : vector<1x128xf32> to vector<16x128xf32>
    %405 = arith.addf %401, %404 : vector<16x128xf32>
    %c0_145 = arith.constant 0 : index
    %c0_146 = arith.constant 0 : index
    %406 = vector.load %arg13[%c0_145, %c0_146] : memref<16x128xf32, #tpu.memory_space<vmem>>, vector<16x128xf32>
    tpu.vector_store %arg13[%c0_145, %c0_146], %405 {strides = array<i32>} : memref<16x128xf32, #tpu.memory_space<vmem>>, vector<16x128xf32>,
    %c2_147 = arith.constant 2 : index
    %c0_148 = arith.constant 0 : index
    %c0_149 = arith.constant 0 : index
    %407 = vector.load %arg3[%c2_147, %c0_148, %c0_149] : memref<3x32x128xf32, #tpu.memory_space<vmem>>, vector<1x32x128xf32>
    %408 = vector.shape_cast %407 : vector<1x32x128xf32> to vector<32x128xf32>
    %c2_150 = arith.constant 2 : index
    %c0_151 = arith.constant 0 : index
    %c0_152 = arith.constant 0 : index
    %409 = vector.load %arg7[%c2_150, %c0_151, %c0_152] : memref<3x2x32xf32, #tpu.memory_space<vmem>>, vector<1x2x32xf32>
    %410 = vector.shape_cast %409 : vector<1x2x32xf32> to vector<2x32xf32>
    %c2_153 = arith.constant 2 : index
    %c0_154 = arith.constant 0 : index
    %c0_155 = arith.constant 0 : index
    %411 = vector.load %arg8[%c2_153, %c0_154, %c0_155] : memref<3x2x32xf32, #tpu.memory_space<vmem>>, vector<1x2x32xf32>
    %412 = vector.shape_cast %411 : vector<1x2x32xf32> to vector<2x32xf32>
    %c0_i32_156 = arith.constant 0 : i32
    %c2_i32_157 = arith.constant 2 : i32
    %413 = arith.muli %c0_i32_156, %c2_i32_157 : i32
    %414 = arith.index_cast %413 : i32 to index
    %c0_158 = arith.constant 0 : index
    %415 = vector.load %arg13[%414, %c0_158] : memref<16x128xf32, #tpu.memory_space<vmem>>, vector<2x128xf32>
    %cst_159 = arith.constant dense<0.000000e+00> : vector<2x128xf32>
    %416 = tpu.matmul %410, %408, %cst_159 {dimension_numbers = #tpu.dot_dimension_numbers<[1], [0], [0], [1], [0, 0, 1, 1], [], []>} : vector<2x32xf32>, vector<32x128xf32>, vector<2x128xf32> -> vector<2x128xf32>
    %417 = arith.addf %415, %416 : vector<2x128xf32>
    %418 = arith.negf %417 : vector<2x128xf32>
    %419 = math.exp %418 : vector<2x128xf32>
    %cst_160 = arith.constant 1.000000e+00 : f32
    %420 = vector.broadcast %cst_160 : f32 to vector<2x128xf32>
    %421 = arith.addf %420, %419 : vector<2x128xf32>
    %422 = arith.divf %420, %421 : vector<2x128xf32>
    %423 = math.tanh %417 : vector<2x128xf32>
    %424 = vector.extract_strided_slice %422 {offsets = [0, 0], sizes = [2, 32], strides = [1, 1]} : vector<2x128xf32> to vector<2x32xf32>
    %425 = vector.extract_strided_slice %422 {offsets = [0, 32], sizes = [2, 32], strides = [1, 1]} : vector<2x128xf32> to vector<2x32xf32>
    %426 = vector.extract_strided_slice %423 {offsets = [0, 64], sizes = [2, 32], strides = [1, 1]} : vector<2x128xf32> to vector<2x32xf32>
    %427 = vector.extract_strided_slice %422 {offsets = [0, 96], sizes = [2, 32], strides = [1, 1]} : vector<2x128xf32> to vector<2x32xf32>
    %428 = arith.mulf %425, %412 : vector<2x32xf32>
    %429 = arith.mulf %424, %426 : vector<2x32xf32>
    %430 = arith.addf %428, %429 : vector<2x32xf32>
    %431 = math.tanh %430 : vector<2x32xf32>
    %432 = arith.mulf %427, %431 : vector<2x32xf32>
    %433 = arith.index_cast %413 : i32 to index
    %c0_161 = arith.constant 0 : index
    %434 = vector.load %arg12[%433, %c0_161] : memref<16x32xf32, #tpu.memory_space<vmem>>, vector<2x32xf32>
    tpu.vector_store %arg12[%433, %c0_161], %432 {strides = array<i32>} : memref<16x32xf32, #tpu.memory_space<vmem>>, vector<2x32xf32>,
    %c1_i32_162 = arith.constant 1 : i32
    %c2_i32_163 = arith.constant 2 : i32
    %435 = arith.muli %c1_i32_162, %c2_i32_163 : i32
    %436 = arith.index_cast %435 : i32 to index
    %c0_164 = arith.constant 0 : index
    %437 = vector.load %arg13[%436, %c0_164] : memref<16x128xf32, #tpu.memory_space<vmem>>, vector<2x128xf32>
    %cst_165 = arith.constant dense<0.000000e+00> : vector<2x128xf32>
    %438 = tpu.matmul %432, %408, %cst_165 {dimension_numbers = #tpu.dot_dimension_numbers<[1], [0], [0], [1], [0, 0, 1, 1], [], []>} : vector<2x32xf32>, vector<32x128xf32>, vector<2x128xf32> -> vector<2x128xf32>
    %439 = arith.addf %437, %438 : vector<2x128xf32>
    %440 = arith.negf %439 : vector<2x128xf32>
    %441 = math.exp %440 : vector<2x128xf32>
    %cst_166 = arith.constant 1.000000e+00 : f32
    %442 = vector.broadcast %cst_166 : f32 to vector<2x128xf32>
    %443 = arith.addf %442, %441 : vector<2x128xf32>
    %444 = arith.divf %442, %443 : vector<2x128xf32>
    %445 = math.tanh %439 : vector<2x128xf32>
    %446 = vector.extract_strided_slice %444 {offsets = [0, 0], sizes = [2, 32], strides = [1, 1]} : vector<2x128xf32> to vector<2x32xf32>
    %447 = vector.extract_strided_slice %444 {offsets = [0, 32], sizes = [2, 32], strides = [1, 1]} : vector<2x128xf32> to vector<2x32xf32>
    %448 = vector.extract_strided_slice %445 {offsets = [0, 64], sizes = [2, 32], strides = [1, 1]} : vector<2x128xf32> to vector<2x32xf32>
    %449 = vector.extract_strided_slice %444 {offsets = [0, 96], sizes = [2, 32], strides = [1, 1]} : vector<2x128xf32> to vector<2x32xf32>
    %450 = arith.mulf %447, %430 : vector<2x32xf32>
    %451 = arith.mulf %446, %448 : vector<2x32xf32>
    %452 = arith.addf %450, %451 : vector<2x32xf32>
    %453 = math.tanh %452 : vector<2x32xf32>
    %454 = arith.mulf %449, %453 : vector<2x32xf32>
    %455 = arith.index_cast %435 : i32 to index
    %c0_167 = arith.constant 0 : index
    %456 = vector.load %arg12[%455, %c0_167] : memref<16x32xf32, #tpu.memory_space<vmem>>, vector<2x32xf32>
    tpu.vector_store %arg12[%455, %c0_167], %454 {strides = array<i32>} : memref<16x32xf32, #tpu.memory_space<vmem>>, vector<2x32xf32>,
    %c2_i32_168 = arith.constant 2 : i32
    %c2_i32_169 = arith.constant 2 : i32
    %457 = arith.muli %c2_i32_168, %c2_i32_169 : i32
    %458 = arith.index_cast %457 : i32 to index
    %c0_170 = arith.constant 0 : index
    %459 = vector.load %arg13[%458, %c0_170] : memref<16x128xf32, #tpu.memory_space<vmem>>, vector<2x128xf32>
    %cst_171 = arith.constant dense<0.000000e+00> : vector<2x128xf32>
    %460 = tpu.matmul %454, %408, %cst_171 {dimension_numbers = #tpu.dot_dimension_numbers<[1], [0], [0], [1], [0, 0, 1, 1], [], []>} : vector<2x32xf32>, vector<32x128xf32>, vector<2x128xf32> -> vector<2x128xf32>
    %461 = arith.addf %459, %460 : vector<2x128xf32>
    %462 = arith.negf %461 : vector<2x128xf32>
    %463 = math.exp %462 : vector<2x128xf32>
    %cst_172 = arith.constant 1.000000e+00 : f32
    %464 = vector.broadcast %cst_172 : f32 to vector<2x128xf32>
    %465 = arith.addf %464, %463 : vector<2x128xf32>
    %466 = arith.divf %464, %465 : vector<2x128xf32>
    %467 = math.tanh %461 : vector<2x128xf32>
    %468 = vector.extract_strided_slice %466 {offsets = [0, 0], sizes = [2, 32], strides = [1, 1]} : vector<2x128xf32> to vector<2x32xf32>
    %469 = vector.extract_strided_slice %466 {offsets = [0, 32], sizes = [2, 32], strides = [1, 1]} : vector<2x128xf32> to vector<2x32xf32>
    %470 = vector.extract_strided_slice %467 {offsets = [0, 64], sizes = [2, 32], strides = [1, 1]} : vector<2x128xf32> to vector<2x32xf32>
    %471 = vector.extract_strided_slice %466 {offsets = [0, 96], sizes = [2, 32], strides = [1, 1]} : vector<2x128xf32> to vector<2x32xf32>
    %472 = arith.mulf %469, %452 : vector<2x32xf32>
    %473 = arith.mulf %468, %470 : vector<2x32xf32>
    %474 = arith.addf %472, %473 : vector<2x32xf32>
    %475 = math.tanh %474 : vector<2x32xf32>
    %476 = arith.mulf %471, %475 : vector<2x32xf32>
    %477 = arith.index_cast %457 : i32 to index
    %c0_173 = arith.constant 0 : index
    %478 = vector.load %arg12[%477, %c0_173] : memref<16x32xf32, #tpu.memory_space<vmem>>, vector<2x32xf32>
    tpu.vector_store %arg12[%477, %c0_173], %476 {strides = array<i32>} : memref<16x32xf32, #tpu.memory_space<vmem>>, vector<2x32xf32>,
    %c3_i32_174 = arith.constant 3 : i32
    %c2_i32_175 = arith.constant 2 : i32
    %479 = arith.muli %c3_i32_174, %c2_i32_175 : i32
    %480 = arith.index_cast %479 : i32 to index
    %c0_176 = arith.constant 0 : index
    %481 = vector.load %arg13[%480, %c0_176] : memref<16x128xf32, #tpu.memory_space<vmem>>, vector<2x128xf32>
    %cst_177 = arith.constant dense<0.000000e+00> : vector<2x128xf32>
    %482 = tpu.matmul %476, %408, %cst_177 {dimension_numbers = #tpu.dot_dimension_numbers<[1], [0], [0], [1], [0, 0, 1, 1], [], []>} : vector<2x32xf32>, vector<32x128xf32>, vector<2x128xf32> -> vector<2x128xf32>
    %483 = arith.addf %481, %482 : vector<2x128xf32>
    %484 = arith.negf %483 : vector<2x128xf32>
    %485 = math.exp %484 : vector<2x128xf32>
    %cst_178 = arith.constant 1.000000e+00 : f32
    %486 = vector.broadcast %cst_178 : f32 to vector<2x128xf32>
    %487 = arith.addf %486, %485 : vector<2x128xf32>
    %488 = arith.divf %486, %487 : vector<2x128xf32>
    %489 = math.tanh %483 : vector<2x128xf32>
    %490 = vector.extract_strided_slice %488 {offsets = [0, 0], sizes = [2, 32], strides = [1, 1]} : vector<2x128xf32> to vector<2x32xf32>
    %491 = vector.extract_strided_slice %488 {offsets = [0, 32], sizes = [2, 32], strides = [1, 1]} : vector<2x128xf32> to vector<2x32xf32>
    %492 = vector.extract_strided_slice %489 {offsets = [0, 64], sizes = [2, 32], strides = [1, 1]} : vector<2x128xf32> to vector<2x32xf32>
    %493 = vector.extract_strided_slice %488 {offsets = [0, 96], sizes = [2, 32], strides = [1, 1]} : vector<2x128xf32> to vector<2x32xf32>
    %494 = arith.mulf %491, %474 : vector<2x32xf32>
    %495 = arith.mulf %490, %492 : vector<2x32xf32>
    %496 = arith.addf %494, %495 : vector<2x32xf32>
    %497 = math.tanh %496 : vector<2x32xf32>
    %498 = arith.mulf %493, %497 : vector<2x32xf32>
    %499 = arith.index_cast %479 : i32 to index
    %c0_179 = arith.constant 0 : index
    %500 = vector.load %arg12[%499, %c0_179] : memref<16x32xf32, #tpu.memory_space<vmem>>, vector<2x32xf32>
    tpu.vector_store %arg12[%499, %c0_179], %498 {strides = array<i32>} : memref<16x32xf32, #tpu.memory_space<vmem>>, vector<2x32xf32>,
    %c4_i32_180 = arith.constant 4 : i32
    %c2_i32_181 = arith.constant 2 : i32
    %501 = arith.muli %c4_i32_180, %c2_i32_181 : i32
    %502 = arith.index_cast %501 : i32 to index
    %c0_182 = arith.constant 0 : index
    %503 = vector.load %arg13[%502, %c0_182] : memref<16x128xf32, #tpu.memory_space<vmem>>, vector<2x128xf32>
    %cst_183 = arith.constant dense<0.000000e+00> : vector<2x128xf32>
    %504 = tpu.matmul %498, %408, %cst_183 {dimension_numbers = #tpu.dot_dimension_numbers<[1], [0], [0], [1], [0, 0, 1, 1], [], []>} : vector<2x32xf32>, vector<32x128xf32>, vector<2x128xf32> -> vector<2x128xf32>
    %505 = arith.addf %503, %504 : vector<2x128xf32>
    %506 = arith.negf %505 : vector<2x128xf32>
    %507 = math.exp %506 : vector<2x128xf32>
    %cst_184 = arith.constant 1.000000e+00 : f32
    %508 = vector.broadcast %cst_184 : f32 to vector<2x128xf32>
    %509 = arith.addf %508, %507 : vector<2x128xf32>
    %510 = arith.divf %508, %509 : vector<2x128xf32>
    %511 = math.tanh %505 : vector<2x128xf32>
    %512 = vector.extract_strided_slice %510 {offsets = [0, 0], sizes = [2, 32], strides = [1, 1]} : vector<2x128xf32> to vector<2x32xf32>
    %513 = vector.extract_strided_slice %510 {offsets = [0, 32], sizes = [2, 32], strides = [1, 1]} : vector<2x128xf32> to vector<2x32xf32>
    %514 = vector.extract_strided_slice %511 {offsets = [0, 64], sizes = [2, 32], strides = [1, 1]} : vector<2x128xf32> to vector<2x32xf32>
    %515 = vector.extract_strided_slice %510 {offsets = [0, 96], sizes = [2, 32], strides = [1, 1]} : vector<2x128xf32> to vector<2x32xf32>
    %516 = arith.mulf %513, %496 : vector<2x32xf32>
    %517 = arith.mulf %512, %514 : vector<2x32xf32>
    %518 = arith.addf %516, %517 : vector<2x32xf32>
    %519 = math.tanh %518 : vector<2x32xf32>
    %520 = arith.mulf %515, %519 : vector<2x32xf32>
    %521 = arith.index_cast %501 : i32 to index
    %c0_185 = arith.constant 0 : index
    %522 = vector.load %arg12[%521, %c0_185] : memref<16x32xf32, #tpu.memory_space<vmem>>, vector<2x32xf32>
    tpu.vector_store %arg12[%521, %c0_185], %520 {strides = array<i32>} : memref<16x32xf32, #tpu.memory_space<vmem>>, vector<2x32xf32>,
    %c5_i32_186 = arith.constant 5 : i32
    %c2_i32_187 = arith.constant 2 : i32
    %523 = arith.muli %c5_i32_186, %c2_i32_187 : i32
    %524 = arith.index_cast %523 : i32 to index
    %c0_188 = arith.constant 0 : index
    %525 = vector.load %arg13[%524, %c0_188] : memref<16x128xf32, #tpu.memory_space<vmem>>, vector<2x128xf32>
    %cst_189 = arith.constant dense<0.000000e+00> : vector<2x128xf32>
    %526 = tpu.matmul %520, %408, %cst_189 {dimension_numbers = #tpu.dot_dimension_numbers<[1], [0], [0], [1], [0, 0, 1, 1], [], []>} : vector<2x32xf32>, vector<32x128xf32>, vector<2x128xf32> -> vector<2x128xf32>
    %527 = arith.addf %525, %526 : vector<2x128xf32>
    %528 = arith.negf %527 : vector<2x128xf32>
    %529 = math.exp %528 : vector<2x128xf32>
    %cst_190 = arith.constant 1.000000e+00 : f32
    %530 = vector.broadcast %cst_190 : f32 to vector<2x128xf32>
    %531 = arith.addf %530, %529 : vector<2x128xf32>
    %532 = arith.divf %530, %531 : vector<2x128xf32>
    %533 = math.tanh %527 : vector<2x128xf32>
    %534 = vector.extract_strided_slice %532 {offsets = [0, 0], sizes = [2, 32], strides = [1, 1]} : vector<2x128xf32> to vector<2x32xf32>
    %535 = vector.extract_strided_slice %532 {offsets = [0, 32], sizes = [2, 32], strides = [1, 1]} : vector<2x128xf32> to vector<2x32xf32>
    %536 = vector.extract_strided_slice %533 {offsets = [0, 64], sizes = [2, 32], strides = [1, 1]} : vector<2x128xf32> to vector<2x32xf32>
    %537 = vector.extract_strided_slice %532 {offsets = [0, 96], sizes = [2, 32], strides = [1, 1]} : vector<2x128xf32> to vector<2x32xf32>
    %538 = arith.mulf %535, %518 : vector<2x32xf32>
    %539 = arith.mulf %534, %536 : vector<2x32xf32>
    %540 = arith.addf %538, %539 : vector<2x32xf32>
    %541 = math.tanh %540 : vector<2x32xf32>
    %542 = arith.mulf %537, %541 : vector<2x32xf32>
    %543 = arith.index_cast %523 : i32 to index
    %c0_191 = arith.constant 0 : index
    %544 = vector.load %arg12[%543, %c0_191] : memref<16x32xf32, #tpu.memory_space<vmem>>, vector<2x32xf32>
    tpu.vector_store %arg12[%543, %c0_191], %542 {strides = array<i32>} : memref<16x32xf32, #tpu.memory_space<vmem>>, vector<2x32xf32>,
    %c6_i32_192 = arith.constant 6 : i32
    %c2_i32_193 = arith.constant 2 : i32
    %545 = arith.muli %c6_i32_192, %c2_i32_193 : i32
    %546 = arith.index_cast %545 : i32 to index
    %c0_194 = arith.constant 0 : index
    %547 = vector.load %arg13[%546, %c0_194] : memref<16x128xf32, #tpu.memory_space<vmem>>, vector<2x128xf32>
    %cst_195 = arith.constant dense<0.000000e+00> : vector<2x128xf32>
    %548 = tpu.matmul %542, %408, %cst_195 {dimension_numbers = #tpu.dot_dimension_numbers<[1], [0], [0], [1], [0, 0, 1, 1], [], []>} : vector<2x32xf32>, vector<32x128xf32>, vector<2x128xf32> -> vector<2x128xf32>
    %549 = arith.addf %547, %548 : vector<2x128xf32>
    %550 = arith.negf %549 : vector<2x128xf32>
    %551 = math.exp %550 : vector<2x128xf32>
    %cst_196 = arith.constant 1.000000e+00 : f32
    %552 = vector.broadcast %cst_196 : f32 to vector<2x128xf32>
    %553 = arith.addf %552, %551 : vector<2x128xf32>
    %554 = arith.divf %552, %553 : vector<2x128xf32>
    %555 = math.tanh %549 : vector<2x128xf32>
    %556 = vector.extract_strided_slice %554 {offsets = [0, 0], sizes = [2, 32], strides = [1, 1]} : vector<2x128xf32> to vector<2x32xf32>
    %557 = vector.extract_strided_slice %554 {offsets = [0, 32], sizes = [2, 32], strides = [1, 1]} : vector<2x128xf32> to vector<2x32xf32>
    %558 = vector.extract_strided_slice %555 {offsets = [0, 64], sizes = [2, 32], strides = [1, 1]} : vector<2x128xf32> to vector<2x32xf32>
    %559 = vector.extract_strided_slice %554 {offsets = [0, 96], sizes = [2, 32], strides = [1, 1]} : vector<2x128xf32> to vector<2x32xf32>
    %560 = arith.mulf %557, %540 : vector<2x32xf32>
    %561 = arith.mulf %556, %558 : vector<2x32xf32>
    %562 = arith.addf %560, %561 : vector<2x32xf32>
    %563 = math.tanh %562 : vector<2x32xf32>
    %564 = arith.mulf %559, %563 : vector<2x32xf32>
    %565 = arith.index_cast %545 : i32 to index
    %c0_197 = arith.constant 0 : index
    %566 = vector.load %arg12[%565, %c0_197] : memref<16x32xf32, #tpu.memory_space<vmem>>, vector<2x32xf32>
    tpu.vector_store %arg12[%565, %c0_197], %564 {strides = array<i32>} : memref<16x32xf32, #tpu.memory_space<vmem>>, vector<2x32xf32>,
    %c7_i32_198 = arith.constant 7 : i32
    %c2_i32_199 = arith.constant 2 : i32
    %567 = arith.muli %c7_i32_198, %c2_i32_199 : i32
    %568 = arith.index_cast %567 : i32 to index
    %c0_200 = arith.constant 0 : index
    %569 = vector.load %arg13[%568, %c0_200] : memref<16x128xf32, #tpu.memory_space<vmem>>, vector<2x128xf32>
    %cst_201 = arith.constant dense<0.000000e+00> : vector<2x128xf32>
    %570 = tpu.matmul %564, %408, %cst_201 {dimension_numbers = #tpu.dot_dimension_numbers<[1], [0], [0], [1], [0, 0, 1, 1], [], []>} : vector<2x32xf32>, vector<32x128xf32>, vector<2x128xf32> -> vector<2x128xf32>
    %571 = arith.addf %569, %570 : vector<2x128xf32>
    %572 = arith.negf %571 : vector<2x128xf32>
    %573 = math.exp %572 : vector<2x128xf32>
    %cst_202 = arith.constant 1.000000e+00 : f32
    %574 = vector.broadcast %cst_202 : f32 to vector<2x128xf32>
    %575 = arith.addf %574, %573 : vector<2x128xf32>
    %576 = arith.divf %574, %575 : vector<2x128xf32>
    %577 = math.tanh %571 : vector<2x128xf32>
    %578 = vector.extract_strided_slice %576 {offsets = [0, 0], sizes = [2, 32], strides = [1, 1]} : vector<2x128xf32> to vector<2x32xf32>
    %579 = vector.extract_strided_slice %576 {offsets = [0, 32], sizes = [2, 32], strides = [1, 1]} : vector<2x128xf32> to vector<2x32xf32>
    %580 = vector.extract_strided_slice %577 {offsets = [0, 64], sizes = [2, 32], strides = [1, 1]} : vector<2x128xf32> to vector<2x32xf32>
    %581 = vector.extract_strided_slice %576 {offsets = [0, 96], sizes = [2, 32], strides = [1, 1]} : vector<2x128xf32> to vector<2x32xf32>
    %582 = arith.mulf %579, %562 : vector<2x32xf32>
    %583 = arith.mulf %578, %580 : vector<2x32xf32>
    %584 = arith.addf %582, %583 : vector<2x32xf32>
    %585 = math.tanh %584 : vector<2x32xf32>
    %586 = arith.mulf %581, %585 : vector<2x32xf32>
    %587 = arith.index_cast %567 : i32 to index
    %c0_203 = arith.constant 0 : index
    %588 = vector.load %arg12[%587, %c0_203] : memref<16x32xf32, #tpu.memory_space<vmem>>, vector<2x32xf32>
    tpu.vector_store %arg12[%587, %c0_203], %586 {strides = array<i32>} : memref<16x32xf32, #tpu.memory_space<vmem>>, vector<2x32xf32>,
    %c8_i32_204 = arith.constant 8 : i32
    %c2_205 = arith.constant 2 : index
    %c0_206 = arith.constant 0 : index
    %c0_207 = arith.constant 0 : index
    %589 = vector.load %arg10[%c2_205, %c0_206, %c0_207] : memref<3x2x32xf32, #tpu.memory_space<vmem>>, vector<1x2x32xf32>
    %590 = vector.shape_cast %589 : vector<1x2x32xf32> to vector<2x32xf32>
    %591 = vector.shape_cast %586 : vector<2x32xf32> to vector<1x2x32xf32>
    tpu.vector_store %arg10[%c2_205, %c0_206, %c0_207], %591 {strides = array<i32>} : memref<3x2x32xf32, #tpu.memory_space<vmem>>, vector<1x2x32xf32>,
    %c2_208 = arith.constant 2 : index
    %c0_209 = arith.constant 0 : index
    %c0_210 = arith.constant 0 : index
    %592 = vector.load %arg11[%c2_208, %c0_209, %c0_210] : memref<3x2x32xf32, #tpu.memory_space<vmem>>, vector<1x2x32xf32>
    %593 = vector.shape_cast %592 : vector<1x2x32xf32> to vector<2x32xf32>
    %594 = vector.shape_cast %584 : vector<2x32xf32> to vector<1x2x32xf32>
    tpu.vector_store %arg11[%c2_208, %c0_209, %c0_210], %594 {strides = array<i32>} : memref<3x2x32xf32, #tpu.memory_space<vmem>>, vector<1x2x32xf32>,
    %c0_211 = arith.constant 0 : index
    %c0_212 = arith.constant 0 : index
    %595 = vector.load %arg12[%c0_211, %c0_212] : memref<16x32xf32, #tpu.memory_space<vmem>>, vector<16x32xf32>
    %c0_213 = arith.constant 0 : index
    %c0_214 = arith.constant 0 : index
    %596 = vector.load %arg5[%c0_213, %c0_214] : memref<32x128xf32, #tpu.memory_space<vmem>>, vector<32x128xf32>
    %cst_215 = arith.constant dense<0.000000e+00> : vector<16x128xf32>
    %597 = tpu.matmul %595, %596, %cst_215 {dimension_numbers = #tpu.dot_dimension_numbers<[1], [0], [0], [1], [0, 0, 1, 1], [], []>} : vector<16x32xf32>, vector<32x128xf32>, vector<16x128xf32> -> vector<16x128xf32>
    %c0_216 = arith.constant 0 : index
    %c0_217 = arith.constant 0 : index
    %598 = vector.load %arg6[%c0_216, %c0_217] : memref<1x128xf32, #tpu.memory_space<vmem>>, vector<1x128xf32>
    %599 = vector.broadcast %598 : vector<1x128xf32> to vector<16x128xf32>
    %600 = arith.addf %597, %599 : vector<16x128xf32>
    %c0_218 = arith.constant 0 : index
    %c0_219 = arith.constant 0 : index
    %601 = vector.load %arg9[%c0_218, %c0_219] : memref<16x128xf32, #tpu.memory_space<vmem>>, vector<16x128xf32>
    tpu.vector_store %arg9[%c0_218, %c0_219], %600 {strides = array<i32>} : memref<16x128xf32, #tpu.memory_space<vmem>>, vector<16x128xf32>,
    return
  }
}

</mosaic_0001>

<bundles_post_ra>
// kernel: char_lstm_forward.1
= control target key start
LH: loop header
LB: loop body
LE: loop exit
PB: predicated region body
PF: predicated region fallthrough
CT: control target
= control target key end

     0   :  { %17 = vsyncpa [#allocation5], 0  ;;  %s4635_s0 = inlined_call_operand.vmem [shape: s32[16,1], index: 0, kind: input, shape index: {}]   ;;  %s4636_s1 = inlined_call_operand.vmem [shape: f32[16,128], index: 1, kind: input, shape index: {}]   ;;  %s4637_s2 = inlined_call_operand.hbm [shape: f32[2,32,128], index: 2, kind: input, shape index: {}]   ;;  %s4638_s3 = inlined_call_operand.hbm [shape: f32[3,32,128], index: 3, kind: input, shape index: {}]   ;;  %s4639_s4 = inlined_call_operand.hbm [shape: f32[3,1,128], index: 4, kind: input, shape index: {}]   ;;  %s4640_s5 = inlined_call_operand.vmem [shape: f32[32,128], index: 5, kind: input, shape index: {}]   ;;  %s4641_s6 = inlined_call_operand.hbm [shape: f32[1,128], index: 6, kind: input, shape index: {}]   ;;  %s4642_s7 = inlined_call_operand.vmem [shape: f32[3,2,32], index: 7, kind: input, shape index: {}]   ;;  %s4643_s8 = inlined_call_operand.vmem [shape: f32[3,2,32], index: 8, kind: input, shape index: {}]   ;;  %s4644_s9 = inlined_call_operand.vmem [shape: f32[16,128], index: 9, kind: output, shape index: {0}]   ;;  %s4645_s10 = inlined_call_operand.hbm [shape: f32[3,2,32], index: 10, kind: output, shape index: {1}]   ;;  %s4646_s11 = inlined_call_operand.hbm [shape: f32[3,2,32], index: 11, kind: output, shape index: {2}]  }
   0x1   :  { %18 = vsyncpa [#allocation8], 0 }
   0x2   :  { %19 = vsyncpa [#allocation11], 0 }
   0x3   :  { %20 = vsyncpa [#allocation6], 0 }
   0x4   :  { %21 = vsyncpa [#allocation14], 0  ;;  %s4101_s17 = smov [#allocation7]   ;;  %s4102_s19 = smov [#allocation4]  }
   0x5   :  { %s43_s18 = sshll.u32 %s4101_s17, 4  ;;  %s31_s20 = sshll.u32 %s4102_s19, 4  ;;  %s44_s18 = int_to_ptr.vmem [resolvable:$true] %s43_s18  ;;  %s4179_s20 = int_to_ptr.vmem [resolvable:$true] %s31_s20 }
   0x6   :  { %s3959_s23 = scalar_lea.hbm %s4638_s3, 1536 }
   0x7   :  { %p3960_p0 = scmp.ne.s32.totalorder %s4638_s3, %s3959_s23  ;;  %p3963_p1 = scmp.lt.u32.totalorder %s3959_s23, %s4638_s3 }
   0x9   :  { %p3965_p2 = pnand %p3963_p1, %p3960_p0 }
   0xb   :  { %3968 = shalt.err (!%p3965_p2)
}
   0xc   :  { %s3969_s28 = scalar_lea.vmem %s44_s18, 1536  ;;  %p3974_p4 = scmp.lt.s32.totalorder %s44_s18, %s44_s18 }
   0xd   :  { %p3970_p3 = scmp.ne.s32.totalorder %s44_s18, %s3969_s28  ;;  %p3975_p5 = scmp.lt.s32.totalorder %s3969_s28, %s3969_s28 }
   0xf   :  { %p3976_p6 = por %p3975_p5, %p3974_p4 }
  0x11   :  { %p3977_p7 = pnand %p3976_p6, %p3970_p3 }
  0x13   :  { %3980 = shalt.err (!%p3977_p7)
}
  0x14   :  { %s4103_s29 = smov 128   ;;  %s4104_s30 = smov 8  }
  0x15   :  { %49 = dma.hbm_to_vmem [thread:$0]  %s4638_s3, 1536, %s44_s18, [#allocation8], %s4103_s29, %s4103_s29, %s4104_s30  }
  0x16   :  { %s3981_s16 = scalar_lea.hbm %s4637_s2, 1024 }
  0x17   :  { %p3982_p8 = scmp.ne.s32.totalorder %s4637_s2, %s3981_s16  ;;  %p3985_p9 = scmp.lt.u32.totalorder %s3981_s16, %s4637_s2 }
  0x19   :  { %p3987_p10 = pnand %p3985_p9, %p3982_p8 }
  0x1b   :  { %3990 = shalt.err (!%p3987_p10)
}
  0x1c   :  { %s3991_s23 = scalar_lea.vmem %s4179_s20, 1024  ;;  %p3996_p12 = scmp.lt.s32.totalorder %s4179_s20, %s4179_s20 }
  0x1d   :  { %p3992_p11 = scmp.ne.s32.totalorder %s4179_s20, %s3991_s23  ;;  %p3997_p13 = scmp.lt.s32.totalorder %s3991_s23, %s3991_s23 }
  0x1f   :  { %p3998_p0 = por %p3997_p13, %p3996_p12 }
  0x21   :  { %p3999_p1 = pnand %p3998_p0, %p3992_p11 }
  0x23   :  { %4002 = shalt.err (!%p3999_p1)
}
  0x24   :  { %37 = dma.hbm_to_vmem [thread:$0]  %s4637_s2, 1024, %s4179_s20, [#allocation5], %s4103_s29, %s4103_s29, %s4104_s30  }
  0x25   :  { %s4105_s24 = smov [#allocation9]   ;;  %s4003_s28 = scalar_lea.hbm %s4639_s4, 48 }
  0x26   :  { %s55_s25 = sshll.u32 %s4105_s24, 4  ;;  %p4004_p2 = scmp.ne.s32.totalorder %s4639_s4, %s4003_s28  ;;  %s56_s25 = int_to_ptr.vmem [resolvable:$true] %s55_s25 }
  0x27   :  { %p4007_p3 = scmp.lt.u32.totalorder %s4003_s28, %s4639_s4 }
  0x29   :  { %p4009_p4 = pnand %p4007_p3, %p4004_p2 }
  0x2b   :  { %4012 = shalt.err (!%p4009_p4)
}
  0x2c   :  { %s4013_s16 = scalar_lea.vmem %s56_s25, 48  ;;  %s4017_s2 = scalar_lea.vmem %s56_s25, 64 }
  0x2d   :  { %p4014_p5 = scmp.ne.s32.totalorder %s56_s25, %s4013_s16  ;;  %p4018_p6 = scmp.lt.s32.totalorder %s56_s25, %s56_s25 }
  0x2e   :  { %p4019_p7 = scmp.lt.s32.totalorder %s4017_s2, %s4013_s16 }
  0x30   :  { %p4020_p8 = por %p4019_p7, %p4018_p6 }
  0x32   :  { %p4021_p9 = pnand %p4020_p8, %p4014_p5 }
  0x34   :  { %4024 = shalt.err (!%p4021_p9)
}
  0x35   :  { %s4106_s20 = smov 16   ;;  %s4107_s29 = smov 1  }
  0x36   :  { %61 = dma.hbm_to_vmem [thread:$0]  %s4639_s4, 48, %s56_s25, [#allocation8], %s4106_s20, %s4106_s20, %s4107_s29  }
  0x37   :  { %s4108_s19 = smov [#allocation10]   ;;  %s4025_s3 = scalar_lea.hbm %s4641_s6, 16 }
  0x38   :  { %s70_s21 = sshll.u32 %s4108_s19, 4  ;;  %p4026_p10 = scmp.ne.s32.totalorder %s4641_s6, %s4025_s3  ;;  %s71_s21 = int_to_ptr.vmem [resolvable:$true] %s70_s21 }
  0x39   :  { %p4029_p11 = scmp.lt.u32.totalorder %s4025_s3, %s4641_s6 }
  0x3b   :  { %p4031_p12 = pnand %p4029_p11, %p4026_p10 }
  0x3d   :  { %4034 = shalt.err (!%p4031_p12)
}
  0x3e   :  { %s4035_s28 = scalar_lea.vmem %s71_s21, 16  ;;  %s4039_s4 = scalar_lea.vmem %s71_s21, 32 }
  0x3f   :  { %p4036_p13 = scmp.ne.s32.totalorder %s71_s21, %s4035_s28  ;;  %p4040_p0 = scmp.lt.s32.totalorder %s71_s21, %s71_s21 }
  0x40   :  { %p4041_p1 = scmp.lt.s32.totalorder %s4039_s4, %s4035_s28 }
  0x42   :  { %p4042_p2 = por %p4041_p1, %p4040_p0 }
  0x44   :  { %p4043_p3 = pnand %p4042_p2, %p4036_p13 }
  0x46   :  { %4046 = shalt.err (!%p4043_p3)
}
  0x47   :  { %73 = dma.hbm_to_vmem [thread:$0]  %s4641_s6, 16, %s71_s21, [#allocation11]  }
  0x48   :  { %4091 = dma.done.wait [#allocation5], 1024  }
  0x49   :  { %4092 = vsyncadd [#allocation5], 4294966272 }
  0x4a   :  { %4093 = dma.done.wait [#allocation8], 1584  }
  0x4b   :  { %4094 = vsyncadd [#allocation8], 4294965712 }
  0x4c   :  { %4095 = dma.done.wait [#allocation11], 16  }
  0x4d   :  { %4096 = vsyncadd [#allocation11], 4294967280  ;;  %v4109_v0 = vmov 0   ;;  %v92_v1 = vld [vmem:[%s4635_s0] sm:$0xff]  ;;  %v107_v3 = vld [vmem:[%s4636_s1 + $0x8] sm:$0xff]  ;;  %v4110_v9 = vmov 0.0|0.0   ;;  %v90_v15 = vlaneseq }
  0x4e   :  { %3766 = vset.pattern.permute.xlu0 %v4109_v0  ;;  %v106_v2 = vld [vmem:[%s4636_s1] sm:$0xff]  ;;  %v93_v4 = vld [vmem:[%s4635_s0 + $0x8] sm:$0xff]  ;;  %v201_v8 = vld [vmem:[#allocation7 + $0x10] sm:$0xff]  ;;  %3580 = vmatprep.subr.bf16.mxu1 %v4110_v9  ;;  %vm4111_vm0 = vmmov 0   ;;  %v4112_v12 = vmov 0.0   ;;  %vm206_vm1 = vcmask 261120  }
  0x4f   :  { %95 = vperm.xlu0 %3766, %v92_v1   ;;  %v3576_v5 = vpack.c.bf16 %v107_v3, %v106_v2  ;;  %v199_v6 = vld [vmem:[#allocation7] sm:$0xff]  ;;  %v200_v7 = vld [vmem:[#allocation7 + $0x8] sm:$0xff]  ;;  %v202_v11 = vld [vmem:[#allocation7 + $0x18] sm:$0xff]  ;;  %3287 = vmatprep.mubr.msk.f32.mxu1 %vm4111_vm0, %v4112_v12  ;;  %v91_v16 = vand.u32 127, %v90_v15  ;;  %vm115_vm2 = vcmask 130048   ;;  %s4113_s30 = smov 64  }
  0x50   :  { %v4247_v10 = vpack.c.bf16 %v200_v7, %v199_v6  ;;  %v4253_v13 = vpack.c.bf16 %v202_v11, %v201_v8  ;;  %v203_v14 = vld [vmem:[%s4642_s7] sm:$0x3]  ;;  %s4114_s21 = smov 32   ;;  %vm313_vm5 = vcmask 254976   ;;  %s4117_s20 = smov [#allocation13]  }
  0x51   :  { %3577 = vmatprep.subr.bf16.mxu0 %v3576_v5  ;;  %v3066_v23 = vld [vmem:[#allocation9] ss:$0 sm:$0xff]  ;;  %s3044_s6 = sshll.u32 %s4117_s20, 4  ;;  %s3045_s6 = int_to_ptr.vmem [resolvable:$true] %s3044_s6 }
  0x52   :  { %3579 = vmatpush3.bf16.msra.mxu0 %v3576_v5  ;;  %3582 = vmatpush3.bf16.msra.mxu1 %v4247_v10  ;;  %v204_v31 = vld [vmem:[%s4643_s8] sm:$0x3] }
  0x53   :  { %98 = vperm.xlu0 %3766, %v93_v4   ;;  %3586 = vmatprep.subr.bf16.mxu0 %v4110_v9 }
  0x54   :  { %3583 = vmatprep.subr.bf16.mxu1 %v4110_v9 }
  0x56   :  { %3585 = vmatpush3.bf16.msra.mxu1 %v4253_v13 }
  0x57   :  { %3592 = vmatprep.subr.bf16.mxu1 %v4110_v9 }
  0x59   :  { %3288 = vmatmul.mubr.msk.f32.vlgmr.msra.gmra.mrb[0].mxu1 %vm206_vm1, %v203_v14 }
  0x5a   :  { %3594 = vmatpush3.bf16.msra.mxu1 %v4247_v10  ;;  %3309 = vmatprep.mubr.msk.f32.mxu1 %vm4111_vm0, %v4112_v12 }
  0x5b   :  { %3595 = vmatprep.subr.bf16.mxu1 %v4110_v9 }
  0x5e   :  { %3597 = vmatpush3.bf16.msra.mxu1 %v4253_v13 }
  0x5f   :  { %3604 = vmatprep.subr.bf16.mxu1 %v4110_v9 }
  0xce   :  { %v96_v17 = vpop.permute.xlu0 %95 }
  0xcf   :  { %vm100_vm3 = vcmp.eq.s32.totalorder %v91_v16, %v96_v17 }
  0xd0   :  { %v3064_v18 = vsel %vm100_vm3, 1.0, %v4112_v12 }
  0xd1   :  { %3276 = vmatprep.mubr.msk.f32.mxu0 %vm115_vm2, %v3064_v18 }
  0xd2   :  { %v99_v19 = vpop.permute.xlu0 %98 }
  0xd3   :  { %vm101_vm4 = vcmp.eq.s32.totalorder %v91_v16, %v99_v19 }
  0xd4   :  { %v3065_v20 = vsel %vm101_vm4, 1.0, %v4112_v12 }
  0xd5   :  { %3277 = vmatmul.mubr.msk.f32.vlgmr.msra.gmra.mrb[0].mxu0 %vm115_vm2, %v3065_v20 }
  0xd6   :  { %3588 = vmatpush3.bf16.msra.mxu0 %v4247_v10  ;;  %3298 = vmatprep.mubr.msk.f32.mxu0 %vm4111_vm0, %v4112_v12 }
  0xd7   :  { %3589 = vmatprep.subr.bf16.mxu0 %v4110_v9 }
  0xda   :  { %3591 = vmatpush3.bf16.msra.mxu0 %v4253_v13 }
  0xdb   :  { %3598 = vmatprep.subr.bf16.mxu0 %v4110_v9 }
 0x12c   :  { %v276_v21 = vpop.f32.mrb[0].mxu1 }
 0x12d   :  { %v3289_v22 = vpop.f32.mrb[1].mxu1 }
 0x1a8   :  { %v3278_v24 = vpop.f32.mrb[0].mxu0 }
 0x1a9   :  { %v194_v25 = vadd.f32 %v3278_v24, %v3066_v23  ;;  %v188_v26 = vpop.f32.mrb[1].mxu0 }
 0x1aa   :  { %v189_v27 = vadd.f32 %v3066_v23, %v188_v26 }
 0x1ab   :  { %198 = vst [vmem:[#allocation3 + $0x8] sm:$0xff] %v194_v25 }
 0x1ac   :  { %197 = vst [vmem:[#allocation3] sm:$0xff] %v189_v27 }
 0x1b3   :  { %v205_v28 = vld [vmem:[#allocation3] sm:$0x3]  ;;  %v315_v46 = vld [vmem:[#allocation3 + $0x2] sm:$0x3]  ;;  %v418_v0 = vld [vmem:[#allocation3 + $0x4] sm:$0x3] }
 0x1b4   :  { %v280_v29 = vadd.f32 %v276_v21, %v205_v28  ;;  %v521_v22 = vld [vmem:[#allocation3 + $0x6] sm:$0x3] }
 0x1b6   :  { %3767 = vtanh.f32 %v280_v29  ;;  %v3070_v32 = vmul.f32 -1.442695, %v280_v29 }
 0x1b8   :  { %3769 = vpow2.f32 %v3070_v32 }
 0x1c0   :  { %v3768_v30 = vpop.eup %3767 }
 0x1c1   :  { %294 = vrot.lane.b32.xlu1 %v3768_v30, %s4113_s30 }
 0x1c2   :  { %v3770_v33 = vpop.eup %3769 }
 0x1c3   :  { %v284_v34 = vadd.f32 1.0, %v3770_v33 }
 0x1c5   :  { %289 = vrot.lane.b32.xlu1 %v204_v31, %s4114_s21  ;;  %3771 = vrcp.f32 %v284_v34 }
 0x1cf   :  { %v3772_v35 = vpop.eup %3771 }
 0x233   :  { %v295_v36 = vpop.permute.xlu1 %294 }
 0x234   :  { %v297_v37 = vmul.f32 %v3772_v35, %v295_v36 }
 0x236   :  { %299 = vrot.lane.b32.xlu0 %v297_v37, %s4114_s21 }
 0x237   :  { %v290_v38 = vpop.permute.xlu1 %289 }
 0x238   :  { %v292_v39 = vmul.f32 %v3772_v35, %v290_v38 }
 0x2a8   :  { %v300_v40 = vpop.permute.xlu0 %299 }
 0x2a9   :  { %v302_v41 = vadd.f32 %v300_v40, %v292_v39  ;;  %v624_v40 = vld [vmem:[#allocation3 + $0x8] sm:$0x3] }
 0x2ab   :  { %3773 = vtanh.f32 %v302_v41 }
 0x2b5   :  { %v3774_v42 = vpop.eup %3773 }
 0x2b6   :  { %305 = vrot.lane.b32.xlu1 %v3774_v42, %s4113_s30 }
 0x328   :  { %v306_v43 = vpop.permute.xlu1 %305 }
 0x329   :  { %v308_v44 = vmul.f32 %v3772_v35, %v306_v43 }
 0x32b   :  { %310 = vrot.lane.b32.xlu0 %v308_v44, %s4114_s21 }
 0x39d   :  { %v311_v45 = vpop.permute.xlu0 %310 }
 0x39e   :  { %314 = vst.msk [vmem:[#allocation2] sm:$0x3] %vm313_vm5, %v311_v45  ;;  %3299 = vmatmul.mubr.msk.f32.vlgmr.msra.gmra.mrb[2].mxu0 %vm206_vm1, %v311_v45 }
 0x39f   :  { %3600 = vmatpush3.bf16.msra.mxu0 %v4247_v10  ;;  %3320 = vmatprep.mubr.msk.f32.mxu0 %vm4111_vm0, %v4112_v12 }
 0x3a0   :  { %3601 = vmatprep.subr.bf16.mxu0 %v4110_v9 }
 0x3a3   :  { %3603 = vmatpush3.bf16.msra.mxu0 %v4253_v13 }
 0x3a4   :  { %3610 = vmatprep.subr.bf16.mxu0 %v4110_v9 }
 0x471   :  { %v384_v47 = vpop.f32.mrb[2].mxu0 }
 0x472   :  { %v388_v48 = vadd.f32 %v384_v47, %v315_v46  ;;  %v3300_v49 = vpop.f32.mrb[3].mxu0 }
 0x474   :  { %3775 = vtanh.f32 %v388_v48  ;;  %v3072_v51 = vmul.f32 -1.442695, %v388_v48 }
 0x476   :  { %3777 = vpow2.f32 %v3072_v51 }
 0x47e   :  { %v3776_v50 = vpop.eup %3775 }
 0x47f   :  { %398 = vrot.lane.b32.xlu1 %v3776_v50, %s4113_s30 }
 0x480   :  { %v3778_v52 = vpop.eup %3777 }
 0x481   :  { %v392_v53 = vadd.f32 1.0, %v3778_v52 }
 0x483   :  { %3779 = vrcp.f32 %v392_v53 }
 0x48d   :  { %v3780_v54 = vpop.eup %3779 }
 0x48e   :  { %v396_v57 = vmul.f32 %v3780_v54, %v302_v41 }
 0x4f1   :  { %v399_v55 = vpop.permute.xlu1 %398 }
 0x4f2   :  { %v401_v56 = vmul.f32 %v3780_v54, %v399_v55 }
 0x4f4   :  { %403 = vrot.lane.b32.xlu0 %v401_v56, %s4114_s21 }
 0x566   :  { %v404_v58 = vpop.permute.xlu0 %403 }
 0x567   :  { %v406_v59 = vadd.f32 %v404_v58, %v396_v57  ;;  %v727_v58 = vld [vmem:[#allocation3 + $0xa] sm:$0x3] }
 0x569   :  { %3781 = vtanh.f32 %v406_v59 }
 0x573   :  { %v3782_v60 = vpop.eup %3781 }
 0x574   :  { %409 = vrot.lane.b32.xlu1 %v3782_v60, %s4113_s30 }
 0x5e6   :  { %v410_v61 = vpop.permute.xlu1 %409 }
 0x5e7   :  { %v412_v62 = vmul.f32 %v3780_v54, %v410_v61 }
 0x5e9   :  { %414 = vrot.lane.b32.xlu0 %v412_v62, %s4114_s21 }
 0x65b   :  { %v415_v63 = vpop.permute.xlu0 %414 }
 0x65c   :  { %417 = vst.msk [vmem:[#allocation2 + $0x2] sm:$0x3] %vm313_vm5, %v415_v63  ;;  %3310 = vmatmul.mubr.msk.f32.vlgmr.msra.gmra.mrb[2].mxu1 %vm206_vm1, %v415_v63 }
 0x65d   :  { %3606 = vmatpush3.bf16.msra.mxu1 %v4247_v10  ;;  %3331 = vmatprep.mubr.msk.f32.mxu1 %vm4111_vm0, %v4112_v12 }
 0x65e   :  { %3607 = vmatprep.subr.bf16.mxu1 %v4110_v9 }
 0x661   :  { %3609 = vmatpush3.bf16.msra.mxu1 %v4253_v13 }
 0x662   :  { %3616 = vmatprep.subr.bf16.mxu1 %v4110_v9 }
 0x72f   :  { %v487_v1 = vpop.f32.mrb[2].mxu1 }
 0x730   :  { %v491_v2 = vadd.f32 %v487_v1, %v418_v0  ;;  %v3311_v3 = vpop.f32.mrb[3].mxu1 }
 0x732   :  { %3783 = vtanh.f32 %v491_v2  ;;  %v3074_v5 = vmul.f32 -1.442695, %v491_v2 }
 0x734   :  { %3785 = vpow2.f32 %v3074_v5 }
 0x73c   :  { %v3784_v4 = vpop.eup %3783 }
 0x73d   :  { %501 = vrot.lane.b32.xlu1 %v3784_v4, %s4113_s30 }
 0x73e   :  { %v3786_v6 = vpop.eup %3785 }
 0x73f   :  { %v495_v7 = vadd.f32 1.0, %v3786_v6 }
 0x741   :  { %3787 = vrcp.f32 %v495_v7 }
 0x74b   :  { %v3788_v8 = vpop.eup %3787 }
 0x74c   :  { %v499_v15 = vmul.f32 %v3788_v8, %v406_v59 }
 0x7af   :  { %v502_v11 = vpop.permute.xlu1 %501 }
 0x7b0   :  { %v504_v14 = vmul.f32 %v3788_v8, %v502_v11 }
 0x7b2   :  { %506 = vrot.lane.b32.xlu0 %v504_v14, %s4114_s21 }
 0x824   :  { %v507_v16 = vpop.permute.xlu0 %506 }
 0x825   :  { %v509_v17 = vadd.f32 %v507_v16, %v499_v15  ;;  %v830_v15 = vld [vmem:[#allocation3 + $0xc] sm:$0x3] }
 0x827   :  { %3789 = vtanh.f32 %v509_v17 }
 0x831   :  { %v3790_v18 = vpop.eup %3789 }
 0x832   :  { %512 = vrot.lane.b32.xlu1 %v3790_v18, %s4113_s30 }
 0x8a4   :  { %v513_v19 = vpop.permute.xlu1 %512 }
 0x8a5   :  { %v515_v20 = vmul.f32 %v3788_v8, %v513_v19 }
 0x8a7   :  { %517 = vrot.lane.b32.xlu0 %v515_v20, %s4114_s21 }
 0x919   :  { %v518_v21 = vpop.permute.xlu0 %517 }
 0x91a   :  { %520 = vst.msk [vmem:[#allocation2 + $0x4] sm:$0x3] %vm313_vm5, %v518_v21  ;;  %3321 = vmatmul.mubr.msk.f32.vlgmr.msra.gmra.mrb[4].mxu0 %vm206_vm1, %v518_v21 }
 0x91b   :  { %3612 = vmatpush3.bf16.msra.mxu0 %v4247_v10  ;;  %3342 = vmatprep.mubr.msk.f32.mxu0 %vm4111_vm0, %v4112_v12 }
 0x91c   :  { %3613 = vmatprep.subr.bf16.mxu0 %v4110_v9 }
 0x91f   :  { %3615 = vmatpush3.bf16.msra.mxu0 %v4253_v13 }
 0x920   :  { %3622 = vmatprep.subr.bf16.mxu0 %v4110_v9 }
 0x9ed   :  { %v590_v23 = vpop.f32.mrb[4].mxu0 }
 0x9ee   :  { %v594_v24 = vadd.f32 %v590_v23, %v521_v22  ;;  %v3322_v25 = vpop.f32.mrb[5].mxu0 }
 0x9f0   :  { %3791 = vtanh.f32 %v594_v24  ;;  %v3076_v27 = vmul.f32 -1.442695, %v594_v24 }
 0x9f2   :  { %3793 = vpow2.f32 %v3076_v27 }
 0x9fa   :  { %v3792_v26 = vpop.eup %3791 }
 0x9fb   :  { %604 = vrot.lane.b32.xlu1 %v3792_v26, %s4113_s30 }
 0x9fc   :  { %v3794_v28 = vpop.eup %3793 }
 0x9fd   :  { %v598_v29 = vadd.f32 1.0, %v3794_v28 }
 0x9ff   :  { %3795 = vrcp.f32 %v598_v29 }
 0xa09   :  { %v3796_v30 = vpop.eup %3795 }
 0xa0a   :  { %v602_v33 = vmul.f32 %v3796_v30, %v509_v17 }
 0xa6d   :  { %v605_v31 = vpop.permute.xlu1 %604 }
 0xa6e   :  { %v607_v32 = vmul.f32 %v3796_v30, %v605_v31 }
 0xa70   :  { %609 = vrot.lane.b32.xlu0 %v607_v32, %s4114_s21 }
 0xae2   :  { %v610_v34 = vpop.permute.xlu0 %609 }
 0xae3   :  { %v612_v35 = vadd.f32 %v610_v34, %v602_v33  ;;  %v933_v33 = vld [vmem:[#allocation3 + $0xe] sm:$0x3] }
 0xae5   :  { %3797 = vtanh.f32 %v612_v35 }
 0xaef   :  { %v3798_v36 = vpop.eup %3797 }
 0xaf0   :  { %615 = vrot.lane.b32.xlu1 %v3798_v36, %s4113_s30 }
 0xb62   :  { %v616_v37 = vpop.permute.xlu1 %615 }
 0xb63   :  { %v618_v38 = vmul.f32 %v3796_v30, %v616_v37 }
 0xb65   :  { %620 = vrot.lane.b32.xlu0 %v618_v38, %s4114_s21 }
 0xbd7   :  { %v621_v39 = vpop.permute.xlu0 %620 }
 0xbd8   :  { %623 = vst.msk [vmem:[#allocation2 + $0x6] sm:$0x3] %vm313_vm5, %v621_v39  ;;  %3332 = vmatmul.mubr.msk.f32.vlgmr.msra.gmra.mrb[4].mxu1 %vm206_vm1, %v621_v39 }
 0xbd9   :  { %3618 = vmatpush3.bf16.msra.mxu1 %v4247_v10  ;;  %3353 = vmatprep.mubr.msk.f32.mxu1 %vm4111_vm0, %v4112_v12 }
 0xbda   :  { %3619 = vmatprep.subr.bf16.mxu1 %v4110_v9 }
 0xbdd   :  { %3621 = vmatpush3.bf16.msra.mxu1 %v4253_v13 }
 0xbdf   :  { %v1042_v14 = vld [vmem:[#allocation2] sm:$0xff] }
 0xcab   :  { %v693_v41 = vpop.f32.mrb[4].mxu1 }
 0xcac   :  { %v697_v42 = vadd.f32 %v693_v41, %v624_v40  ;;  %v3333_v43 = vpop.f32.mrb[5].mxu1 }
 0xcae   :  { %3799 = vtanh.f32 %v697_v42  ;;  %v3078_v45 = vmul.f32 -1.442695, %v697_v42 }
 0xcb0   :  { %3801 = vpow2.f32 %v3078_v45 }
 0xcb8   :  { %v3800_v44 = vpop.eup %3799 }
 0xcb9   :  { %707 = vrot.lane.b32.xlu1 %v3800_v44, %s4113_s30 }
 0xcba   :  { %v3802_v46 = vpop.eup %3801 }
 0xcbb   :  { %v701_v47 = vadd.f32 1.0, %v3802_v46 }
 0xcbd   :  { %3803 = vrcp.f32 %v701_v47 }
 0xcc7   :  { %v3804_v48 = vpop.eup %3803 }
 0xcc8   :  { %v705_v51 = vmul.f32 %v3804_v48, %v612_v35 }
 0xd2b   :  { %v708_v49 = vpop.permute.xlu1 %707 }
 0xd2c   :  { %v710_v50 = vmul.f32 %v3804_v48, %v708_v49  ;;  %v1045_v49 = vld [vmem:[#allocation4 + $0x8] sm:$0xff] }
 0xd2e   :  { %712 = vrot.lane.b32.xlu0 %v710_v50, %s4114_s21 }
 0xda0   :  { %v713_v52 = vpop.permute.xlu0 %712 }
 0xda1   :  { %v715_v53 = vadd.f32 %v713_v52, %v705_v51  ;;  %v1046_v51 = vld [vmem:[#allocation4 + $0x10] sm:$0xff]  ;;  %v1047_v52 = vld [vmem:[#allocation4 + $0x18] sm:$0xff] }
 0xda3   :  { %3805 = vtanh.f32 %v715_v53 }
 0xdad   :  { %v3806_v54 = vpop.eup %3805 }
 0xdae   :  { %718 = vrot.lane.b32.xlu1 %v3806_v54, %s4113_s30  ;;  %v1140_v54 = vld [vmem:[#allocation7 + $0x20] sm:$0xff] }
 0xe20   :  { %v719_v55 = vpop.permute.xlu1 %718 }
 0xe21   :  { %v721_v56 = vmul.f32 %v3804_v48, %v719_v55  ;;  %v1044_v48 = vld [vmem:[#allocation4] sm:$0xff]  ;;  %v1141_v55 = vld [vmem:[#allocation7 + $0x28] sm:$0xff] }
 0xe22   :  { %v3628_v50 = vpack.c.bf16 %v1045_v49, %v1044_v48 }
 0xe23   :  { %723 = vrot.lane.b32.xlu0 %v721_v56, %s4114_s21  ;;  %v1142_v56 = vld [vmem:[#allocation7 + $0x30] sm:$0xff] }
 0xe24   :  { %3629 = vmatprep.subr.bf16.mxu1 %v3628_v50 }
 0xe95   :  { %v724_v57 = vpop.permute.xlu0 %723 }
 0xe96   :  { %726 = vst.msk [vmem:[#allocation2 + $0x8] sm:$0x3] %vm313_vm5, %v724_v57  ;;  %3343 = vmatmul.mubr.msk.f32.vlgmr.msra.gmra.mrb[6].mxu0 %vm206_vm1, %v724_v57  ;;  %v4361_v57 = vpack.c.bf16 %v1141_v55, %v1140_v54 }
 0xe97   :  { %3624 = vmatpush3.bf16.msra.mxu0 %v4247_v10  ;;  %3364 = vmatprep.mubr.msk.f32.mxu0 %vm4111_vm0, %v4112_v12 }
 0xe98   :  { %3625 = vmatprep.subr.bf16.mxu0 %v4110_v9 }
 0xe9b   :  { %3627 = vmatpush3.bf16.msra.mxu0 %v4253_v13 }
 0xe9c   :  { %3636 = vmatprep.subr.bf16.mxu0 %v4110_v9 }
 0xf69   :  { %v796_v59 = vpop.f32.mrb[6].mxu0 }
 0xf6a   :  { %v800_v60 = vadd.f32 %v796_v59, %v727_v58  ;;  %v3344_v61 = vpop.f32.mrb[7].mxu0  ;;  %v1143_v58 = vld [vmem:[#allocation7 + $0x38] sm:$0xff] }
 0xf6b   :  { %v4364_v61 = vpack.c.bf16 %v1143_v58, %v1142_v56 }
 0xf6c   :  { %3807 = vtanh.f32 %v800_v60  ;;  %v3080_v63 = vmul.f32 -1.442695, %v800_v60 }
 0xf6e   :  { %3809 = vpow2.f32 %v3080_v63  ;;  %v3088_v63 = vld [vmem:[%s4642_s7 + $0x2] sm:$0x3] }
 0xf76   :  { %v3808_v62 = vpop.eup %3807 }
 0xf77   :  { %810 = vrot.lane.b32.xlu1 %v3808_v62, %s4113_s30  ;;  %v3089_v62 = vld [vmem:[%s4643_s8 + $0x2] sm:$0x3] }
 0xf78   :  { %v3810_v10 = vpop.eup %3809 }
 0xf79   :  { %v804_v0 = vadd.f32 1.0, %v3810_v10 }
 0xf7b   :  { %3811 = vrcp.f32 %v804_v0 }
 0xf85   :  { %v3812_v1 = vpop.eup %3811 }
 0xf86   :  { %v808_v13 = vmul.f32 %v3812_v1, %v715_v53  ;;  %v3632_v53 = vpack.c.bf16 %v1047_v52, %v1046_v51 }
 0xfe9   :  { %v811_v2 = vpop.permute.xlu1 %810 }
 0xfea   :  { %v813_v3 = vmul.f32 %v3812_v1, %v811_v2 }
 0xfec   :  { %815 = vrot.lane.b32.xlu0 %v813_v3, %s4114_s21  ;;  %v3085_v3 = vld [vmem:[#allocation9 + $0x1] ss:$0 sm:$0xff] }
0x105e   :  { %v816_v4 = vpop.permute.xlu0 %815 }
0x105f   :  { %v818_v5 = vadd.f32 %v816_v4, %v808_v13 }
0x1061   :  { %3813 = vtanh.f32 %v818_v5 }
0x106b   :  { %v3814_v6 = vpop.eup %3813 }
0x106c   :  { %821 = vrot.lane.b32.xlu1 %v3814_v6, %s4113_s30 }
0x10de   :  { %v822_v7 = vpop.permute.xlu1 %821 }
0x10df   :  { %v824_v8 = vmul.f32 %v3812_v1, %v822_v7 }
0x10e1   :  { %826 = vrot.lane.b32.xlu0 %v824_v8, %s4114_s21 }
0x1153   :  { %v827_v11 = vpop.permute.xlu0 %826 }
0x1154   :  { %829 = vst.msk [vmem:[#allocation2 + $0xa] sm:$0x3] %vm313_vm5, %v827_v11  ;;  %3354 = vmatmul.mubr.msk.f32.vlgmr.msra.gmra.mrb[6].mxu1 %vm206_vm1, %v827_v11 }
0x1155   :  { %3375 = vmatprep.mubr.msk.f32.mxu1 %vm206_vm1, %v1042_v14  ;;  %3631 = vmatpush3.bf16.msra.mxu1 %v3628_v50 }
0x1156   :  { %3633 = vmatprep.subr.bf16.mxu1 %v3632_v53 }
0x1159   :  { %3635 = vmatpush3.bf16.msra.mxu1 %v3632_v53 }
0x115a   :  { %3642 = vmatprep.subr.bf16.mxu1 %v4110_v9 }
0x1227   :  { %v899_v16 = vpop.f32.mrb[6].mxu1 }
0x1228   :  { %v903_v17 = vadd.f32 %v899_v16, %v830_v15  ;;  %v3355_v18 = vpop.f32.mrb[7].mxu1 }
0x122a   :  { %3815 = vtanh.f32 %v903_v17  ;;  %v3082_v20 = vmul.f32 -1.442695, %v903_v17 }
0x122c   :  { %3817 = vpow2.f32 %v3082_v20 }
0x1234   :  { %v3816_v19 = vpop.eup %3815 }
0x1235   :  { %913 = vrot.lane.b32.xlu1 %v3816_v19, %s4113_s30 }
0x1236   :  { %v3818_v21 = vpop.eup %3817 }
0x1237   :  { %v907_v22 = vadd.f32 1.0, %v3818_v21 }
0x1239   :  { %3819 = vrcp.f32 %v907_v22 }
0x1243   :  { %v3820_v23 = vpop.eup %3819 }
0x1244   :  { %v911_v26 = vmul.f32 %v3820_v23, %v818_v5 }
0x12a7   :  { %v914_v24 = vpop.permute.xlu1 %913 }
0x12a8   :  { %v916_v25 = vmul.f32 %v3820_v23, %v914_v24 }
0x12aa   :  { %918 = vrot.lane.b32.xlu0 %v916_v25, %s4114_s21 }
0x131c   :  { %v919_v27 = vpop.permute.xlu0 %918 }
0x131d   :  { %v921_v28 = vadd.f32 %v919_v27, %v911_v26 }
0x131f   :  { %3821 = vtanh.f32 %v921_v28 }
0x1329   :  { %v3822_v29 = vpop.eup %3821 }
0x132a   :  { %924 = vrot.lane.b32.xlu1 %v3822_v29, %s4113_s30 }
0x139c   :  { %v925_v30 = vpop.permute.xlu1 %924 }
0x139d   :  { %v927_v31 = vmul.f32 %v3820_v23, %v925_v30 }
0x139f   :  { %929 = vrot.lane.b32.xlu0 %v927_v31, %s4114_s21 }
0x1411   :  { %v930_v32 = vpop.permute.xlu0 %929 }
0x1412   :  { %932 = vst.msk [vmem:[#allocation2 + $0xc] sm:$0x3] %vm313_vm5, %v930_v32  ;;  %3365 = vmatmul.mubr.msk.f32.vlgmr.msra.gmra.mrb[8].mxu0 %vm206_vm1, %v930_v32 }
0x1413   :  { %3386 = vmatprep.mubr.msk.f32.mxu0 %vm4111_vm0, %v4112_v12  ;;  %3638 = vmatpush3.bf16.msra.mxu0 %v4361_v57 }
0x1414   :  { %3639 = vmatprep.subr.bf16.mxu0 %v4110_v9 }
0x1417   :  { %3641 = vmatpush3.bf16.msra.mxu0 %v4364_v61 }
0x1418   :  { %3648 = vmatprep.subr.bf16.mxu0 %v4110_v9 }
0x141a   :  { %3387 = vmatmul.mubr.msk.f32.vlgmr.msra.gmra.mrb[10].mxu0 %vm206_vm1, %v3088_v63 }
0x141b   :  { %3650 = vmatpush3.bf16.msra.mxu0 %v4361_v57  ;;  %3408 = vmatprep.mubr.msk.f32.mxu0 %vm4111_vm0, %v4112_v12 }
0x141c   :  { %3651 = vmatprep.subr.bf16.mxu0 %v4110_v9 }
0x141f   :  { %3653 = vmatpush3.bf16.msra.mxu0 %v4364_v61 }
0x1420   :  { %3660 = vmatprep.subr.bf16.mxu0 %v4110_v9 }
0x14e5   :  { %v1002_v34 = vpop.f32.mrb[8].mxu0 }
0x14e6   :  { %v1006_v35 = vadd.f32 %v1002_v34, %v933_v33  ;;  %v3366_v36 = vpop.f32.mrb[9].mxu0 }
0x14e8   :  { %3823 = vtanh.f32 %v1006_v35  ;;  %v3084_v38 = vmul.f32 -1.442695, %v1006_v35 }
0x14ea   :  { %3825 = vpow2.f32 %v3084_v38 }
0x14ed   :  { %v1218_v1 = vpop.f32.mrb[10].mxu0 }
0x14ee   :  { %v3388_v2 = vpop.f32.mrb[11].mxu0 }
0x14f2   :  { %v3824_v37 = vpop.eup %3823 }
0x14f3   :  { %1016 = vrot.lane.b32.xlu1 %v3824_v37, %s4113_s30 }
0x14f4   :  { %v3826_v39 = vpop.eup %3825 }
0x14f5   :  { %v1010_v40 = vadd.f32 1.0, %v3826_v39 }
0x14f7   :  { %3827 = vrcp.f32 %v1010_v40 }
0x1501   :  { %v3828_v41 = vpop.eup %3827 }
0x1502   :  { %v1014_v44 = vmul.f32 %v3828_v41, %v921_v28 }
0x1565   :  { %v1017_v42 = vpop.permute.xlu1 %1016 }
0x1566   :  { %v1019_v43 = vmul.f32 %v3828_v41, %v1017_v42 }
0x1568   :  { %1021 = vrot.lane.b32.xlu0 %v1019_v43, %s4114_s21 }
0x15da   :  { %v1022_v45 = vpop.permute.xlu0 %1021 }
0x15db   :  { %v4356_v46 = vadd.f32 %v1022_v45, %v1014_v44 }
0x15dd   :  { %3829 = vtanh.f32 %v4356_v46 }
0x15e7   :  { %v3830_v47 = vpop.eup %3829 }
0x15e8   :  { %1027 = vrot.lane.b32.xlu1 %v3830_v47, %s4113_s30 }
0x165a   :  { %v1028_v59 = vpop.permute.xlu1 %1027 }
0x165b   :  { %v1030_v60 = vmul.f32 %v3828_v41, %v1028_v59 }
0x165d   :  { %1032 = vrot.lane.b32.xlu0 %v1030_v60, %s4114_s21 }
0x1661   :  { %1231 = vrot.lane.b32.xlu0 %v3089_v62, %s4114_s21 }
0x16cf   :  { %v1033_v10 = vpop.permute.xlu0 %1032 }
0x16d0   :  { %1035 = vst.msk [vmem:[#allocation2 + $0xe] sm:$0x3] %vm313_vm5, %v1033_v10  ;;  %1036 = vst.msk [vmem:[#allocation12] sm:$0x3] %vm313_vm5, %v1033_v10 }
0x16d3   :  { %v1232_v20 = vpop.permute.xlu0 %1231 }
0x16d7   :  { %v1043_v0 = vld [vmem:[#allocation2 + $0x8] sm:$0xff] }
0x16d8   :  { %3376 = vmatmul.mubr.msk.f32.vlgmr.msra.gmra.mrb[8].mxu1 %vm206_vm1, %v1043_v0 }
0x16d9   :  { %3644 = vmatpush3.bf16.msra.mxu1 %v4361_v57  ;;  %3397 = vmatprep.mubr.msk.f32.mxu1 %vm4111_vm0, %v4112_v12 }
0x16da   :  { %3645 = vmatprep.subr.bf16.mxu1 %v4110_v9 }
0x16dd   :  { %3647 = vmatpush3.bf16.msra.mxu1 %v4364_v61 }
0x16de   :  { %3654 = vmatprep.subr.bf16.mxu1 %v4110_v9 }
0x17ab   :  { %v3377_v13 = vpop.f32.mrb[8].mxu1 }
0x17ac   :  { %v1134_v4 = vadd.f32 %v3377_v13, %v3085_v3  ;;  %v1128_v5 = vpop.f32.mrb[9].mxu1 }
0x17ad   :  { %v1129_v6 = vadd.f32 %v3085_v3, %v1128_v5 }
0x17ae   :  { %1138 = vst [vmem:[#allocation3 + $0x8] sm:$0xff] %v1134_v4 }
0x17af   :  { %1137 = vst [vmem:[#allocation3] sm:$0xff] %v1129_v6 }
0x17b6   :  { %v1148_v7 = vld [vmem:[#allocation3] sm:$0x3]  ;;  %v1256_v28 = vld [vmem:[#allocation3 + $0x2] sm:$0x3]  ;;  %v1359_v47 = vld [vmem:[#allocation3 + $0x4] sm:$0x3] }
0x17b7   :  { %v1222_v8 = vadd.f32 %v1218_v1, %v1148_v7  ;;  %v1462_v2 = vld [vmem:[#allocation3 + $0x6] sm:$0x3] }
0x17b9   :  { %3831 = vtanh.f32 %v1222_v8  ;;  %v3091_v14 = vmul.f32 -1.442695, %v1222_v8 }
0x17bb   :  { %3833 = vpow2.f32 %v3091_v14 }
0x17c3   :  { %v3832_v11 = vpop.eup %3831 }
0x17c4   :  { %1236 = vrot.lane.b32.xlu1 %v3832_v11, %s4113_s30 }
0x17c5   :  { %v3834_v15 = vpop.eup %3833 }
0x17c6   :  { %v1226_v16 = vadd.f32 1.0, %v3834_v15 }
0x17c8   :  { %3835 = vrcp.f32 %v1226_v16 }
0x17d2   :  { %v3836_v17 = vpop.eup %3835 }
0x17d3   :  { %v1234_v21 = vmul.f32 %v3836_v17, %v1232_v20 }
0x1836   :  { %v1237_v18 = vpop.permute.xlu1 %1236 }
0x1837   :  { %v1239_v19 = vmul.f32 %v3836_v17, %v1237_v18 }
0x1839   :  { %1241 = vrot.lane.b32.xlu1 %v1239_v19, %s4114_s21 }
0x18ab   :  { %v1242_v22 = vpop.permute.xlu1 %1241 }
0x18ac   :  { %v1244_v23 = vadd.f32 %v1242_v22, %v1234_v21 }
0x18ae   :  { %3837 = vtanh.f32 %v1244_v23 }
0x18b8   :  { %v3838_v24 = vpop.eup %3837 }
0x18b9   :  { %1247 = vrot.lane.b32.xlu0 %v3838_v24, %s4113_s30 }
0x192b   :  { %v1248_v25 = vpop.permute.xlu0 %1247 }
0x192c   :  { %v1250_v26 = vmul.f32 %v3836_v17, %v1248_v25 }
0x192e   :  { %1252 = vrot.lane.b32.xlu1 %v1250_v26, %s4114_s21 }
0x19a0   :  { %v1253_v27 = vpop.permute.xlu1 %1252 }
0x19a1   :  { %1255 = vst.msk [vmem:[#allocation2] sm:$0x3] %vm313_vm5, %v1253_v27  ;;  %3398 = vmatmul.mubr.msk.f32.vlgmr.msra.gmra.mrb[10].mxu1 %vm206_vm1, %v1253_v27 }
0x19a2   :  { %3656 = vmatpush3.bf16.msra.mxu1 %v4361_v57  ;;  %3419 = vmatprep.mubr.msk.f32.mxu1 %vm4111_vm0, %v4112_v12 }
0x19a3   :  { %3657 = vmatprep.subr.bf16.mxu1 %v4110_v9 }
0x19a6   :  { %3659 = vmatpush3.bf16.msra.mxu1 %v4364_v61 }
0x19a7   :  { %3666 = vmatprep.subr.bf16.mxu1 %v4110_v9 }
0x1a74   :  { %v1325_v29 = vpop.f32.mrb[10].mxu1 }
0x1a75   :  { %v1329_v30 = vadd.f32 %v1325_v29, %v1256_v28  ;;  %v3399_v31 = vpop.f32.mrb[11].mxu1 }
0x1a77   :  { %3839 = vtanh.f32 %v1329_v30  ;;  %v3093_v33 = vmul.f32 -1.442695, %v1329_v30 }
0x1a79   :  { %3841 = vpow2.f32 %v3093_v33 }
0x1a81   :  { %v3840_v32 = vpop.eup %3839 }
0x1a82   :  { %1339 = vrot.lane.b32.xlu0 %v3840_v32, %s4113_s30 }
0x1a83   :  { %v3842_v34 = vpop.eup %3841 }
0x1a84   :  { %v1333_v35 = vadd.f32 1.0, %v3842_v34 }
0x1a86   :  { %3843 = vrcp.f32 %v1333_v35 }
0x1a90   :  { %v3844_v36 = vpop.eup %3843 }
0x1a91   :  { %v1337_v39 = vmul.f32 %v3844_v36, %v1244_v23  ;;  %v1565_v23 = vld [vmem:[#allocation3 + $0x8] sm:$0x3] }
0x1af4   :  { %v1340_v37 = vpop.permute.xlu0 %1339 }
0x1af5   :  { %v1342_v38 = vmul.f32 %v3844_v36, %v1340_v37 }
0x1af7   :  { %1344 = vrot.lane.b32.xlu1 %v1342_v38, %s4114_s21 }
0x1b69   :  { %v1345_v40 = vpop.permute.xlu1 %1344 }
0x1b6a   :  { %v1347_v41 = vadd.f32 %v1345_v40, %v1337_v39 }
0x1b6c   :  { %3845 = vtanh.f32 %v1347_v41 }
0x1b76   :  { %v3846_v42 = vpop.eup %3845 }
0x1b77   :  { %1350 = vrot.lane.b32.xlu0 %v3846_v42, %s4113_s30 }
0x1be9   :  { %v1351_v43 = vpop.permute.xlu0 %1350 }
0x1bea   :  { %v1353_v44 = vmul.f32 %v3844_v36, %v1351_v43 }
0x1bec   :  { %1355 = vrot.lane.b32.xlu1 %v1353_v44, %s4114_s21 }
0x1c5e   :  { %v1356_v45 = vpop.permute.xlu1 %1355 }
0x1c5f   :  { %1358 = vst.msk [vmem:[#allocation2 + $0x2] sm:$0x3] %vm313_vm5, %v1356_v45  ;;  %3409 = vmatmul.mubr.msk.f32.vlgmr.msra.gmra.mrb[12].mxu0 %vm206_vm1, %v1356_v45 }
0x1c60   :  { %3662 = vmatpush3.bf16.msra.mxu0 %v4361_v57  ;;  %3430 = vmatprep.mubr.msk.f32.mxu0 %vm4111_vm0, %v4112_v12 }
0x1c61   :  { %3663 = vmatprep.subr.bf16.mxu0 %v4110_v9 }
0x1c64   :  { %3665 = vmatpush3.bf16.msra.mxu0 %v4364_v61 }
0x1c65   :  { %3672 = vmatprep.subr.bf16.mxu0 %v4110_v9 }
0x1d32   :  { %v1428_v48 = vpop.f32.mrb[12].mxu0 }
0x1d33   :  { %v1432_v49 = vadd.f32 %v1428_v48, %v1359_v47  ;;  %v3410_v50 = vpop.f32.mrb[13].mxu0 }
0x1d35   :  { %3847 = vtanh.f32 %v1432_v49  ;;  %v3095_v52 = vmul.f32 -1.442695, %v1432_v49 }
0x1d37   :  { %3849 = vpow2.f32 %v3095_v52 }
0x1d3f   :  { %v3848_v51 = vpop.eup %3847 }
0x1d40   :  { %1442 = vrot.lane.b32.xlu0 %v3848_v51, %s4113_s30 }
0x1d41   :  { %v3850_v53 = vpop.eup %3849 }
0x1d42   :  { %v1436_v54 = vadd.f32 1.0, %v3850_v53 }
0x1d44   :  { %3851 = vrcp.f32 %v1436_v54 }
0x1d4e   :  { %v3852_v55 = vpop.eup %3851 }
0x1d4f   :  { %v1440_v59 = vmul.f32 %v3852_v55, %v1347_v41  ;;  %v1668_v41 = vld [vmem:[#allocation3 + $0xa] sm:$0x3] }
0x1db2   :  { %v1443_v56 = vpop.permute.xlu0 %1442 }
0x1db3   :  { %v1445_v58 = vmul.f32 %v3852_v55, %v1443_v56 }
0x1db5   :  { %1447 = vrot.lane.b32.xlu1 %v1445_v58, %s4114_s21 }
0x1e27   :  { %v1448_v60 = vpop.permute.xlu1 %1447 }
0x1e28   :  { %v1450_v62 = vadd.f32 %v1448_v60, %v1440_v59  ;;  %v1771_v60 = vld [vmem:[#allocation3 + $0xc] sm:$0x3] }
0x1e2a   :  { %3853 = vtanh.f32 %v1450_v62 }
0x1e34   :  { %v3854_v63 = vpop.eup %3853 }
0x1e35   :  { %1453 = vrot.lane.b32.xlu0 %v3854_v63, %s4113_s30 }
0x1ea7   :  { %v1454_v10 = vpop.permute.xlu0 %1453 }
0x1ea8   :  { %v1456_v0 = vmul.f32 %v3852_v55, %v1454_v10 }
0x1eaa   :  { %1458 = vrot.lane.b32.xlu1 %v1456_v0, %s4114_s21 }
0x1f1c   :  { %v1459_v1 = vpop.permute.xlu1 %1458 }
0x1f1d   :  { %1461 = vst.msk [vmem:[#allocation2 + $0x4] sm:$0x3] %vm313_vm5, %v1459_v1  ;;  %3420 = vmatmul.mubr.msk.f32.vlgmr.msra.gmra.mrb[12].mxu1 %vm206_vm1, %v1459_v1 }
0x1f1e   :  { %3668 = vmatpush3.bf16.msra.mxu1 %v4361_v57  ;;  %3441 = vmatprep.mubr.msk.f32.mxu1 %vm4111_vm0, %v4112_v12 }
0x1f1f   :  { %3669 = vmatprep.subr.bf16.mxu1 %v4110_v9 }
0x1f22   :  { %3671 = vmatpush3.bf16.msra.mxu1 %v4364_v61 }
0x1f23   :  { %3678 = vmatprep.subr.bf16.mxu1 %v4110_v9 }
0x1ff0   :  { %v1531_v3 = vpop.f32.mrb[12].mxu1 }
0x1ff1   :  { %v1535_v13 = vadd.f32 %v1531_v3, %v1462_v2  ;;  %v3421_v4 = vpop.f32.mrb[13].mxu1 }
0x1ff3   :  { %3855 = vtanh.f32 %v1535_v13  ;;  %v3097_v6 = vmul.f32 -1.442695, %v1535_v13 }
0x1ff5   :  { %3857 = vpow2.f32 %v3097_v6 }
0x1ffd   :  { %v3856_v5 = vpop.eup %3855 }
0x1ffe   :  { %1545 = vrot.lane.b32.xlu0 %v3856_v5, %s4113_s30 }
0x1fff   :  { %v3858_v7 = vpop.eup %3857 }
0x2000   :  { %v1539_v8 = vadd.f32 1.0, %v3858_v7 }
0x2002   :  { %3859 = vrcp.f32 %v1539_v8 }
0x200c   :  { %v3860_v11 = vpop.eup %3859 }
0x200d   :  { %v1543_v16 = vmul.f32 %v3860_v11, %v1450_v62 }
0x2070   :  { %v1546_v14 = vpop.permute.xlu0 %1545 }
0x2071   :  { %v1548_v15 = vmul.f32 %v3860_v11, %v1546_v14 }
0x2073   :  { %1550 = vrot.lane.b32.xlu1 %v1548_v15, %s4114_s21 }
0x20e5   :  { %v1551_v17 = vpop.permute.xlu1 %1550 }
0x20e6   :  { %v1553_v18 = vadd.f32 %v1551_v17, %v1543_v16  ;;  %v1874_v17 = vld [vmem:[#allocation3 + $0xe] sm:$0x3] }
0x20e8   :  { %3861 = vtanh.f32 %v1553_v18 }
0x20f2   :  { %v3862_v19 = vpop.eup %3861 }
0x20f3   :  { %1556 = vrot.lane.b32.xlu0 %v3862_v19, %s4113_s30 }
0x2165   :  { %v1557_v20 = vpop.permute.xlu0 %1556 }
0x2166   :  { %v1559_v21 = vmul.f32 %v3860_v11, %v1557_v20 }
0x2168   :  { %1561 = vrot.lane.b32.xlu1 %v1559_v21, %s4114_s21 }
0x21da   :  { %v1562_v22 = vpop.permute.xlu1 %1561 }
0x21db   :  { %1564 = vst.msk [vmem:[#allocation2 + $0x6] sm:$0x3] %vm313_vm5, %v1562_v22  ;;  %3431 = vmatmul.mubr.msk.f32.vlgmr.msra.gmra.mrb[14].mxu0 %vm206_vm1, %v1562_v22 }
0x21dc   :  { %3674 = vmatpush3.bf16.msra.mxu0 %v4361_v57  ;;  %3452 = vmatprep.mubr.msk.f32.mxu0 %vm4111_vm0, %v4112_v12 }
0x21dd   :  { %3675 = vmatprep.subr.bf16.mxu0 %v4110_v9 }
0x21e0   :  { %3677 = vmatpush3.bf16.msra.mxu0 %v4364_v61 }
0x21e2   :  { %v1985_v59 = vld [vmem:[#allocation2] sm:$0xff] }
0x22ae   :  { %v1634_v24 = vpop.f32.mrb[14].mxu0 }
0x22af   :  { %v1638_v25 = vadd.f32 %v1634_v24, %v1565_v23  ;;  %v3432_v26 = vpop.f32.mrb[15].mxu0 }
0x22b1   :  { %3863 = vtanh.f32 %v1638_v25  ;;  %v3099_v28 = vmul.f32 -1.442695, %v1638_v25 }
0x22b3   :  { %3865 = vpow2.f32 %v3099_v28 }
0x22bb   :  { %v3864_v27 = vpop.eup %3863 }
0x22bc   :  { %1648 = vrot.lane.b32.xlu0 %v3864_v27, %s4113_s30 }
0x22bd   :  { %v3866_v29 = vpop.eup %3865 }
0x22be   :  { %v1642_v30 = vadd.f32 1.0, %v3866_v29 }
0x22c0   :  { %3867 = vrcp.f32 %v1642_v30 }
0x22ca   :  { %v3868_v31 = vpop.eup %3867 }
0x22cb   :  { %v1646_v34 = vmul.f32 %v3868_v31, %v1553_v18 }
0x232e   :  { %v1649_v32 = vpop.permute.xlu0 %1648 }
0x232f   :  { %v1651_v33 = vmul.f32 %v3868_v31, %v1649_v32  ;;  %v1988_v32 = vld [vmem:[#allocation4 + $0x20] sm:$0xff] }
0x2331   :  { %1653 = vrot.lane.b32.xlu1 %v1651_v33, %s4114_s21  ;;  %v1989_v33 = vld [vmem:[#allocation4 + $0x28] sm:$0xff] }
0x23a3   :  { %v1654_v35 = vpop.permute.xlu1 %1653 }
0x23a4   :  { %v1656_v36 = vadd.f32 %v1654_v35, %v1646_v34  ;;  %v3684_v34 = vpack.c.bf16 %v1989_v33, %v1988_v32  ;;  %v1990_v35 = vld [vmem:[#allocation4 + $0x30] sm:$0xff] }
0x23a6   :  { %3869 = vtanh.f32 %v1656_v36  ;;  %3685 = vmatprep.subr.bf16.mxu0 %v3684_v34 }
0x23b0   :  { %v3870_v37 = vpop.eup %3869 }
0x23b1   :  { %1659 = vrot.lane.b32.xlu0 %v3870_v37, %s4113_s30 }
0x2423   :  { %v1660_v38 = vpop.permute.xlu0 %1659 }
0x2424   :  { %v1662_v39 = vmul.f32 %v3868_v31, %v1660_v38  ;;  %v2084_v38 = vld [vmem:[#allocation7 + $0x40] sm:$0xff] }
0x2426   :  { %1664 = vrot.lane.b32.xlu1 %v1662_v39, %s4114_s21  ;;  %v2085_v39 = vld [vmem:[#allocation7 + $0x48] sm:$0xff] }
0x2498   :  { %v1665_v40 = vpop.permute.xlu1 %1664 }
0x2499   :  { %1667 = vst.msk [vmem:[#allocation2 + $0x8] sm:$0x3] %vm313_vm5, %v1665_v40  ;;  %3442 = vmatmul.mubr.msk.f32.vlgmr.msra.gmra.mrb[14].mxu1 %vm206_vm1, %v1665_v40  ;;  %v2086_v40 = vld [vmem:[#allocation7 + $0x50] sm:$0xff] }
0x249a   :  { %3680 = vmatpush3.bf16.msra.mxu1 %v4361_v57  ;;  %3463 = vmatprep.mubr.msk.f32.mxu1 %vm4111_vm0, %v4112_v12 }
0x249b   :  { %3681 = vmatprep.subr.bf16.mxu1 %v4110_v9 }
0x249e   :  { %3683 = vmatpush3.bf16.msra.mxu1 %v4364_v61 }
0x249f   :  { %3692 = vmatprep.subr.bf16.mxu1 %v4110_v9 }
0x256c   :  { %v1737_v42 = vpop.f32.mrb[14].mxu1 }
0x256d   :  { %v1741_v43 = vadd.f32 %v1737_v42, %v1668_v41  ;;  %v3443_v44 = vpop.f32.mrb[15].mxu1  ;;  %v4474_v41 = vpack.c.bf16 %v2085_v39, %v2084_v38  ;;  %v2087_v42 = vld [vmem:[#allocation7 + $0x58] sm:$0xff] }
0x256f   :  { %3871 = vtanh.f32 %v1741_v43  ;;  %v3101_v47 = vmul.f32 -1.442695, %v1741_v43 }
0x2571   :  { %3873 = vpow2.f32 %v3101_v47  ;;  %v3110_v47 = vld [vmem:[%s4643_s8 + $0x4] sm:$0x3] }
0x2579   :  { %v3872_v45 = vpop.eup %3871 }
0x257a   :  { %1751 = vrot.lane.b32.xlu0 %v3872_v45, %s4113_s30  ;;  %v4477_v45 = vpack.c.bf16 %v2087_v42, %v2086_v40 }
0x257b   :  { %v3874_v57 = vpop.eup %3873 }
0x257c   :  { %v1745_v48 = vadd.f32 1.0, %v3874_v57  ;;  %v3109_v57 = vld [vmem:[%s4642_s7 + $0x4] sm:$0x3]  ;;  %s4115_s7 = smov 96  }
0x257e   :  { %3875 = vrcp.f32 %v1745_v48 }
0x2588   :  { %v3876_v49 = vpop.eup %3875 }
0x2589   :  { %v1749_v61 = vmul.f32 %v3876_v49, %v1656_v36  ;;  %v1991_v36 = vld [vmem:[#allocation4 + $0x38] sm:$0xff] }
0x258a   :  { %v3688_v37 = vpack.c.bf16 %v1991_v36, %v1990_v35 }
0x25ec   :  { %v1752_v50 = vpop.permute.xlu0 %1751 }
0x25ed   :  { %v1754_v51 = vmul.f32 %v3876_v49, %v1752_v50 }
0x25ef   :  { %1756 = vrot.lane.b32.xlu1 %v1754_v51, %s4114_s21 }
0x2661   :  { %v1757_v52 = vpop.permute.xlu1 %1756 }
0x2662   :  { %v1759_v53 = vadd.f32 %v1757_v52, %v1749_v61  ;;  %v3106_v61 = vld [vmem:[#allocation9 + $0x2] ss:$0 sm:$0xff] }
0x2664   :  { %3877 = vtanh.f32 %v1759_v53 }
0x266e   :  { %v3878_v54 = vpop.eup %3877 }
0x266f   :  { %1762 = vrot.lane.b32.xlu0 %v3878_v54, %s4113_s30 }
0x26e1   :  { %v1763_v55 = vpop.permute.xlu0 %1762 }
0x26e2   :  { %v1765_v56 = vmul.f32 %v3876_v49, %v1763_v55 }
0x26e4   :  { %1767 = vrot.lane.b32.xlu1 %v1765_v56, %s4114_s21 }
0x2756   :  { %v1768_v58 = vpop.permute.xlu1 %1767 }
0x2757   :  { %1770 = vst.msk [vmem:[#allocation2 + $0xa] sm:$0x3] %vm313_vm5, %v1768_v58  ;;  %3453 = vmatmul.mubr.msk.f32.vlgmr.msra.gmra.mrb[16].mxu0 %vm206_vm1, %v1768_v58 }
0x2758   :  { %3474 = vmatprep.mubr.msk.f32.mxu0 %vm206_vm1, %v1985_v59  ;;  %3687 = vmatpush3.bf16.msra.mxu0 %v3684_v34 }
0x2759   :  { %3689 = vmatprep.subr.bf16.mxu0 %v3688_v37 }
0x275c   :  { %3691 = vmatpush3.bf16.msra.mxu0 %v3688_v37 }
0x275d   :  { %3698 = vmatprep.subr.bf16.mxu0 %v4110_v9 }
0x282a   :  { %v1840_v62 = vpop.f32.mrb[16].mxu0 }
0x282b   :  { %v1844_v63 = vadd.f32 %v1840_v62, %v1771_v60  ;;  %v3454_v10 = vpop.f32.mrb[17].mxu0 }
0x282d   :  { %3879 = vtanh.f32 %v1844_v63  ;;  %v3103_v1 = vmul.f32 -1.442695, %v1844_v63 }
0x282f   :  { %3881 = vpow2.f32 %v3103_v1 }
0x2837   :  { %v3880_v0 = vpop.eup %3879 }
0x2838   :  { %1854 = vrot.lane.b32.xlu0 %v3880_v0, %s4113_s30 }
0x2839   :  { %v3882_v2 = vpop.eup %3881 }
0x283a   :  { %v1848_v3 = vadd.f32 1.0, %v3882_v2 }
0x283c   :  { %3883 = vrcp.f32 %v1848_v3 }
0x2846   :  { %v3884_v13 = vpop.eup %3883 }
0x2847   :  { %v1852_v6 = vmul.f32 %v3884_v13, %v1759_v53 }
0x28aa   :  { %v1855_v4 = vpop.permute.xlu0 %1854 }
0x28ab   :  { %v1857_v5 = vmul.f32 %v3884_v13, %v1855_v4 }
0x28ad   :  { %1859 = vrot.lane.b32.xlu1 %v1857_v5, %s4114_s21 }
0x291f   :  { %v1860_v7 = vpop.permute.xlu1 %1859 }
0x2920   :  { %v1862_v8 = vadd.f32 %v1860_v7, %v1852_v6 }
0x2922   :  { %3885 = vtanh.f32 %v1862_v8 }
0x292c   :  { %v3886_v11 = vpop.eup %3885 }
0x292d   :  { %1865 = vrot.lane.b32.xlu0 %v3886_v11, %s4113_s30 }
0x299f   :  { %v1866_v14 = vpop.permute.xlu0 %1865 }
0x29a0   :  { %v1868_v15 = vmul.f32 %v3884_v13, %v1866_v14 }
0x29a2   :  { %1870 = vrot.lane.b32.xlu1 %v1868_v15, %s4114_s21 }
0x2a14   :  { %v1871_v16 = vpop.permute.xlu1 %1870 }
0x2a15   :  { %1873 = vst.msk [vmem:[#allocation2 + $0xc] sm:$0x3] %vm313_vm5, %v1871_v16  ;;  %3464 = vmatmul.mubr.msk.f32.vlgmr.msra.gmra.mrb[16].mxu1 %vm206_vm1, %v1871_v16 }
0x2a16   :  { %3485 = vmatprep.mubr.msk.f32.mxu1 %vm4111_vm0, %v4112_v12  ;;  %3694 = vmatpush3.bf16.msra.mxu1 %v4474_v41 }
0x2a17   :  { %3695 = vmatprep.subr.bf16.mxu1 %v4110_v9 }
0x2a1a   :  { %3697 = vmatpush3.bf16.msra.mxu1 %v4477_v45 }
0x2a1b   :  { %3704 = vmatprep.subr.bf16.mxu1 %v4110_v9 }
0x2a1d   :  { %3486 = vmatmul.mubr.msk.f32.vlgmr.msra.gmra.mrb[18].mxu1 %vm206_vm1, %v3109_v57 }
0x2a1e   :  { %3706 = vmatpush3.bf16.msra.mxu1 %v4474_v41  ;;  %3507 = vmatprep.mubr.msk.f32.mxu1 %vm4111_vm0, %v4112_v12 }
0x2a1f   :  { %3707 = vmatprep.subr.bf16.mxu1 %v4110_v9 }
0x2a22   :  { %3709 = vmatpush3.bf16.msra.mxu1 %v4477_v45 }
0x2a23   :  { %3716 = vmatprep.subr.bf16.mxu1 %v4110_v9 }
0x2ae8   :  { %v1943_v18 = vpop.f32.mrb[16].mxu1 }
0x2ae9   :  { %v1947_v19 = vadd.f32 %v1943_v18, %v1874_v17  ;;  %v3465_v20 = vpop.f32.mrb[17].mxu1 }
0x2aeb   :  { %3887 = vtanh.f32 %v1947_v19  ;;  %v3105_v22 = vmul.f32 -1.442695, %v1947_v19 }
0x2aed   :  { %3889 = vpow2.f32 %v3105_v22 }
0x2af0   :  { %v2162_v50 = vpop.f32.mrb[18].mxu1 }
0x2af1   :  { %v3487_v51 = vpop.f32.mrb[19].mxu1 }
0x2af5   :  { %v3888_v21 = vpop.eup %3887 }
0x2af6   :  { %1957 = vrot.lane.b32.xlu0 %v3888_v21, %s4113_s30 }
0x2af7   :  { %v3890_v23 = vpop.eup %3889 }
0x2af8   :  { %v1951_v24 = vadd.f32 1.0, %v3890_v23 }
0x2afa   :  { %3891 = vrcp.f32 %v1951_v24 }
0x2b04   :  { %v3892_v25 = vpop.eup %3891 }
0x2b05   :  { %v1955_v28 = vmul.f32 %v3892_v25, %v1862_v8 }
0x2b68   :  { %v1958_v26 = vpop.permute.xlu0 %1957 }
0x2b69   :  { %v1960_v27 = vmul.f32 %v3892_v25, %v1958_v26 }
0x2b6b   :  { %1962 = vrot.lane.b32.xlu1 %v1960_v27, %s4114_s21 }
0x2bdd   :  { %v1963_v29 = vpop.permute.xlu1 %1962 }
0x2bde   :  { %v4469_v30 = vadd.f32 %v1963_v29, %v1955_v28 }
0x2be0   :  { %3893 = vtanh.f32 %v4469_v30 }
0x2bea   :  { %v3894_v31 = vpop.eup %3893 }
0x2beb   :  { %1968 = vrot.lane.b32.xlu0 %v3894_v31, %s4113_s30 }
0x2c5d   :  { %v1969_v43 = vpop.permute.xlu0 %1968 }
0x2c5e   :  { %v1971_v44 = vmul.f32 %v3892_v25, %v1969_v43 }
0x2c60   :  { %1973 = vrot.lane.b32.xlu1 %v1971_v44, %s4114_s21 }
0x2c64   :  { %2175 = vrot.lane.b32.xlu1 %v3110_v47, %s4114_s21 }
0x2cd2   :  { %v1974_v48 = vpop.permute.xlu1 %1973 }
0x2cd3   :  { %1976 = vst.msk [vmem:[#allocation2 + $0xe] sm:$0x3] %vm313_vm5, %v1974_v48  ;;  %1978 = vst.msk [vmem:[#allocation12 + $0x2] sm:$0x3] %vm313_vm5, %v1974_v48 }
0x2cd6   :  { %v2176_v2 = vpop.permute.xlu1 %2175 }
0x2cda   :  { %v1986_v49 = vld [vmem:[#allocation2 + $0x8] sm:$0xff] }
0x2cdb   :  { %3475 = vmatmul.mubr.msk.f32.vlgmr.msra.gmra.mrb[18].mxu0 %vm206_vm1, %v1986_v49 }
0x2cdc   :  { %3700 = vmatpush3.bf16.msra.mxu0 %v4474_v41  ;;  %3496 = vmatprep.mubr.msk.f32.mxu0 %vm4111_vm0, %v4112_v12 }
0x2cdd   :  { %3701 = vmatprep.subr.bf16.mxu0 %v4110_v9 }
0x2ce0   :  { %3703 = vmatpush3.bf16.msra.mxu0 %v4477_v45 }
0x2ce1   :  { %3710 = vmatprep.subr.bf16.mxu0 %v4110_v9 }
0x2dae   :  { %v3476_v52 = vpop.f32.mrb[18].mxu0 }
0x2daf   :  { %v2078_v53 = vadd.f32 %v3476_v52, %v3106_v61  ;;  %v2072_v54 = vpop.f32.mrb[19].mxu0 }
0x2db0   :  { %v2073_v55 = vadd.f32 %v3106_v61, %v2072_v54 }
0x2db1   :  { %2082 = vst [vmem:[#allocation3 + $0x8] sm:$0xff] %v2078_v53 }
0x2db2   :  { %2081 = vst [vmem:[#allocation3] sm:$0xff] %v2073_v55 }
0x2db9   :  { %v2092_v56 = vld [vmem:[#allocation3] sm:$0x3]  ;;  %v2200_v11 = vld [vmem:[#allocation3 + $0x2] sm:$0x3]  ;;  %v2303_v32 = vld [vmem:[#allocation3 + $0x4] sm:$0x3] }
0x2dba   :  { %v2166_v58 = vadd.f32 %v2162_v50, %v2092_v56  ;;  %v2406_v61 = vld [vmem:[#allocation3 + $0x6] sm:$0x3] }
0x2dbc   :  { %3895 = vtanh.f32 %v2166_v58  ;;  %v3112_v60 = vmul.f32 -1.442695, %v2166_v58 }
0x2dbe   :  { %3897 = vpow2.f32 %v3112_v60 }
0x2dc6   :  { %v3896_v59 = vpop.eup %3895 }
0x2dc7   :  { %2180 = vrot.lane.b32.xlu0 %v3896_v59, %s4113_s30 }
0x2dc8   :  { %v3898_v62 = vpop.eup %3897 }
0x2dc9   :  { %v2170_v63 = vadd.f32 1.0, %v3898_v62 }
0x2dcb   :  { %3899 = vrcp.f32 %v2170_v63 }
0x2dd5   :  { %v3900_v10 = vpop.eup %3899 }
0x2dd6   :  { %v2178_v3 = vmul.f32 %v3900_v10, %v2176_v2 }
0x2e39   :  { %v2181_v0 = vpop.permute.xlu0 %2180 }
0x2e3a   :  { %v2183_v1 = vmul.f32 %v3900_v10, %v2181_v0 }
0x2e3c   :  { %2185 = vrot.lane.b32.xlu0 %v2183_v1, %s4114_s21 }
0x2eae   :  { %v2186_v13 = vpop.permute.xlu0 %2185 }
0x2eaf   :  { %v2188_v4 = vadd.f32 %v2186_v13, %v2178_v3 }
0x2eb1   :  { %3901 = vtanh.f32 %v2188_v4 }
0x2ebb   :  { %v3902_v5 = vpop.eup %3901 }
0x2ebc   :  { %2191 = vrot.lane.b32.xlu1 %v3902_v5, %s4113_s30  ;;  %v2509_v5 = vld [vmem:[#allocation3 + $0x8] sm:$0x3] }
0x2f2e   :  { %v2192_v6 = vpop.permute.xlu1 %2191 }
0x2f2f   :  { %v2194_v7 = vmul.f32 %v3900_v10, %v2192_v6 }
0x2f31   :  { %2196 = vrot.lane.b32.xlu0 %v2194_v7, %s4114_s21 }
0x2fa3   :  { %v2197_v8 = vpop.permute.xlu0 %2196 }
0x2fa4   :  { %2199 = vst.msk [vmem:[#allocation2] sm:$0x3] %vm313_vm5, %v2197_v8  ;;  %3497 = vmatmul.mubr.msk.f32.vlgmr.msra.gmra.mrb[20].mxu0 %vm206_vm1, %v2197_v8 }
0x2fa5   :  { %3712 = vmatpush3.bf16.msra.mxu0 %v4474_v41  ;;  %3518 = vmatprep.mubr.msk.f32.mxu0 %vm4111_vm0, %v4112_v12 }
0x2fa6   :  { %3713 = vmatprep.subr.bf16.mxu0 %v4110_v9 }
0x2fa9   :  { %3715 = vmatpush3.bf16.msra.mxu0 %v4477_v45 }
0x2faa   :  { %3722 = vmatprep.subr.bf16.mxu0 %v4110_v9 }
0x3077   :  { %v2269_v14 = vpop.f32.mrb[20].mxu0 }
0x3078   :  { %v2273_v15 = vadd.f32 %v2269_v14, %v2200_v11  ;;  %v3498_v16 = vpop.f32.mrb[21].mxu0 }
0x307a   :  { %3903 = vtanh.f32 %v2273_v15  ;;  %v3114_v18 = vmul.f32 -1.442695, %v2273_v15 }
0x307c   :  { %3905 = vpow2.f32 %v3114_v18 }
0x3084   :  { %v3904_v17 = vpop.eup %3903 }
0x3085   :  { %2283 = vrot.lane.b32.xlu1 %v3904_v17, %s4113_s30 }
0x3086   :  { %v3906_v19 = vpop.eup %3905 }
0x3087   :  { %v2277_v20 = vadd.f32 1.0, %v3906_v19 }
0x3089   :  { %3907 = vrcp.f32 %v2277_v20 }
0x3093   :  { %v3908_v21 = vpop.eup %3907 }
0x3094   :  { %v2281_v24 = vmul.f32 %v3908_v21, %v2188_v4 }
0x30f7   :  { %v2284_v22 = vpop.permute.xlu1 %2283 }
0x30f8   :  { %v2286_v23 = vmul.f32 %v3908_v21, %v2284_v22 }
0x30fa   :  { %2288 = vrot.lane.b32.xlu0 %v2286_v23, %s4114_s21 }
0x316c   :  { %v2289_v25 = vpop.permute.xlu0 %2288 }
0x316d   :  { %v2291_v26 = vadd.f32 %v2289_v25, %v2281_v24 }
0x316f   :  { %3909 = vtanh.f32 %v2291_v26 }
0x3179   :  { %v3910_v27 = vpop.eup %3909 }
0x317a   :  { %2294 = vrot.lane.b32.xlu1 %v3910_v27, %s4113_s30  ;;  %v2612_v27 = vld [vmem:[#allocation3 + $0xa] sm:$0x3] }
0x31ec   :  { %v2295_v28 = vpop.permute.xlu1 %2294 }
0x31ed   :  { %v2297_v29 = vmul.f32 %v3908_v21, %v2295_v28 }
0x31ef   :  { %2299 = vrot.lane.b32.xlu0 %v2297_v29, %s4114_s21 }
0x3261   :  { %v2300_v31 = vpop.permute.xlu0 %2299 }
0x3262   :  { %2302 = vst.msk [vmem:[#allocation2 + $0x2] sm:$0x3] %vm313_vm5, %v2300_v31  ;;  %3508 = vmatmul.mubr.msk.f32.vlgmr.msra.gmra.mrb[20].mxu1 %vm206_vm1, %v2300_v31 }
0x3263   :  { %3718 = vmatpush3.bf16.msra.mxu1 %v4474_v41  ;;  %3529 = vmatprep.mubr.msk.f32.mxu1 %vm4111_vm0, %v4112_v12 }
0x3264   :  { %3719 = vmatprep.subr.bf16.mxu1 %v4110_v9 }
0x3267   :  { %3721 = vmatpush3.bf16.msra.mxu1 %v4477_v45 }
0x3268   :  { %3728 = vmatprep.subr.bf16.mxu1 %v4110_v9 }
0x3335   :  { %v2372_v33 = vpop.f32.mrb[20].mxu1 }
0x3336   :  { %v2376_v34 = vadd.f32 %v2372_v33, %v2303_v32  ;;  %v3509_v35 = vpop.f32.mrb[21].mxu1 }
0x3338   :  { %3911 = vtanh.f32 %v2376_v34  ;;  %v3116_v37 = vmul.f32 -1.442695, %v2376_v34 }
0x333a   :  { %3913 = vpow2.f32 %v3116_v37 }
0x3342   :  { %v3912_v36 = vpop.eup %3911 }
0x3343   :  { %2386 = vrot.lane.b32.xlu1 %v3912_v36, %s4113_s30 }
0x3344   :  { %v3914_v38 = vpop.eup %3913 }
0x3345   :  { %v2380_v39 = vadd.f32 1.0, %v3914_v38 }
0x3347   :  { %3915 = vrcp.f32 %v2380_v39 }
0x3351   :  { %v3916_v40 = vpop.eup %3915 }
0x3352   :  { %v2384_v44 = vmul.f32 %v3916_v40, %v2291_v26 }
0x33b5   :  { %v2387_v42 = vpop.permute.xlu1 %2386 }
0x33b6   :  { %v2389_v43 = vmul.f32 %v3916_v40, %v2387_v42 }
0x33b8   :  { %2391 = vrot.lane.b32.xlu0 %v2389_v43, %s4114_s21 }
0x342a   :  { %v2392_v47 = vpop.permute.xlu0 %2391 }
0x342b   :  { %v2394_v57 = vadd.f32 %v2392_v47, %v2384_v44  ;;  %v2715_v44 = vld [vmem:[#allocation3 + $0xc] sm:$0x3] }
0x342d   :  { %3917 = vtanh.f32 %v2394_v57 }
0x3437   :  { %v3918_v48 = vpop.eup %3917 }
0x3438   :  { %2397 = vrot.lane.b32.xlu1 %v3918_v48, %s4113_s30 }
0x34aa   :  { %v2398_v49 = vpop.permute.xlu1 %2397 }
0x34ab   :  { %v2400_v50 = vmul.f32 %v3916_v40, %v2398_v49 }
0x34ad   :  { %2402 = vrot.lane.b32.xlu0 %v2400_v50, %s4114_s21 }
0x351f   :  { %v2403_v51 = vpop.permute.xlu0 %2402 }
0x3520   :  { %2405 = vst.msk [vmem:[#allocation2 + $0x4] sm:$0x3] %vm313_vm5, %v2403_v51  ;;  %3519 = vmatmul.mubr.msk.f32.vlgmr.msra.gmra.mrb[22].mxu0 %vm206_vm1, %v2403_v51 }
0x3521   :  { %3724 = vmatpush3.bf16.msra.mxu0 %v4474_v41  ;;  %3540 = vmatprep.mubr.msk.f32.mxu0 %vm4111_vm0, %v4112_v12 }
0x3522   :  { %3725 = vmatprep.subr.bf16.mxu0 %v4110_v9 }
0x3525   :  { %3727 = vmatpush3.bf16.msra.mxu0 %v4477_v45 }
0x3526   :  { %3734 = vmatprep.subr.bf16.mxu0 %v4110_v9 }
0x35f3   :  { %v2475_v52 = vpop.f32.mrb[22].mxu0 }
0x35f4   :  { %v2479_v53 = vadd.f32 %v2475_v52, %v2406_v61  ;;  %v3520_v54 = vpop.f32.mrb[23].mxu0 }
0x35f6   :  { %3919 = vtanh.f32 %v2479_v53  ;;  %v3118_v56 = vmul.f32 -1.442695, %v2479_v53 }
0x35f8   :  { %3921 = vpow2.f32 %v3118_v56 }
0x3600   :  { %v3920_v55 = vpop.eup %3919 }
0x3601   :  { %2489 = vrot.lane.b32.xlu1 %v3920_v55, %s4113_s30 }
0x3602   :  { %v3922_v58 = vpop.eup %3921 }
0x3603   :  { %v2483_v59 = vadd.f32 1.0, %v3922_v58 }
0x3605   :  { %3923 = vrcp.f32 %v2483_v59 }
0x360f   :  { %v3924_v60 = vpop.eup %3923 }
0x3610   :  { %v2487_v10 = vmul.f32 %v3924_v60, %v2394_v57 }
0x3673   :  { %v2490_v62 = vpop.permute.xlu1 %2489 }
0x3674   :  { %v2492_v63 = vmul.f32 %v3924_v60, %v2490_v62 }
0x3676   :  { %2494 = vrot.lane.b32.xlu0 %v2492_v63, %s4114_s21 }
0x36e8   :  { %v2495_v0 = vpop.permute.xlu0 %2494 }
0x36e9   :  { %v2497_v1 = vadd.f32 %v2495_v0, %v2487_v10  ;;  %v2818_v10 = vld [vmem:[#allocation3 + $0xe] sm:$0x3] }
0x36eb   :  { %3925 = vtanh.f32 %v2497_v1 }
0x36f5   :  { %v3926_v2 = vpop.eup %3925 }
0x36f6   :  { %2500 = vrot.lane.b32.xlu1 %v3926_v2, %s4113_s30 }
0x3768   :  { %v2501_v3 = vpop.permute.xlu1 %2500 }
0x3769   :  { %v2503_v13 = vmul.f32 %v3924_v60, %v2501_v3 }
0x376b   :  { %2505 = vrot.lane.b32.xlu0 %v2503_v13, %s4114_s21 }
0x37dd   :  { %v2506_v4 = vpop.permute.xlu0 %2505 }
0x37de   :  { %2508 = vst.msk [vmem:[#allocation2 + $0x6] sm:$0x3] %vm313_vm5, %v2506_v4  ;;  %3530 = vmatmul.mubr.msk.f32.vlgmr.msra.gmra.mrb[22].mxu1 %vm206_vm1, %v2506_v4 }
0x37df   :  { %3730 = vmatpush3.bf16.msra.mxu1 %v4474_v41  ;;  %3551 = vmatprep.mubr.msk.f32.mxu1 %vm4111_vm0, %v4112_v12 }
0x37e0   :  { %3731 = vmatprep.subr.bf16.mxu1 %v4110_v9 }
0x37e3   :  { %3733 = vmatpush3.bf16.msra.mxu1 %v4477_v45 }
0x37e5   :  { %v2929_v43 = vld [vmem:[#allocation2] sm:$0xff] }
0x38b1   :  { %v2578_v6 = vpop.f32.mrb[22].mxu1 }
0x38b2   :  { %v2582_v7 = vadd.f32 %v2578_v6, %v2509_v5  ;;  %v3531_v8 = vpop.f32.mrb[23].mxu1 }
0x38b4   :  { %3927 = vtanh.f32 %v2582_v7  ;;  %v3120_v14 = vmul.f32 -1.442695, %v2582_v7 }
0x38b6   :  { %3929 = vpow2.f32 %v3120_v14 }
0x38be   :  { %v3928_v11 = vpop.eup %3927 }
0x38bf   :  { %2592 = vrot.lane.b32.xlu1 %v3928_v11, %s4113_s30 }
0x38c0   :  { %v3930_v15 = vpop.eup %3929 }
0x38c1   :  { %v2586_v16 = vadd.f32 1.0, %v3930_v15 }
0x38c3   :  { %3931 = vrcp.f32 %v2586_v16 }
0x38cd   :  { %v3932_v17 = vpop.eup %3931 }
0x38ce   :  { %v2590_v20 = vmul.f32 %v3932_v17, %v2497_v1 }
0x3931   :  { %v2593_v18 = vpop.permute.xlu1 %2592 }
0x3932   :  { %v2595_v19 = vmul.f32 %v3932_v17, %v2593_v18  ;;  %v2932_v18 = vld [vmem:[%s4640_s5 + $0x8] sm:$0xff] }
0x3934   :  { %2597 = vrot.lane.b32.xlu0 %v2595_v19, %s4114_s21 }
0x39a6   :  { %v2598_v21 = vpop.permute.xlu0 %2597 }
0x39a7   :  { %v2600_v22 = vadd.f32 %v2598_v21, %v2590_v20  ;;  %v2933_v20 = vld [vmem:[%s4640_s5 + $0x10] sm:$0xff] }
0x39a9   :  { %3933 = vtanh.f32 %v2600_v22 }
0x39b3   :  { %v3934_v23 = vpop.eup %3933 }
0x39b4   :  { %2603 = vrot.lane.b32.xlu1 %v3934_v23, %s4113_s30 }
0x3a26   :  { %v2604_v24 = vpop.permute.xlu1 %2603 }
0x3a27   :  { %v2606_v25 = vmul.f32 %v3932_v17, %v2604_v24  ;;  %v2931_v17 = vld [vmem:[%s4640_s5] sm:$0xff] }
0x3a28   :  { %v3740_v19 = vpack.c.bf16 %v2932_v18, %v2931_v17 }
0x3a29   :  { %2608 = vrot.lane.b32.xlu0 %v2606_v25, %s4114_s21 }
0x3a2a   :  { %3741 = vmatprep.subr.bf16.mxu1 %v3740_v19 }
0x3a9b   :  { %v2609_v26 = vpop.permute.xlu0 %2608 }
0x3a9c   :  { %2611 = vst.msk [vmem:[#allocation2 + $0x8] sm:$0x3] %vm313_vm5, %v2609_v26  ;;  %3541 = vmatmul.mubr.msk.f32.vlgmr.msra.gmra.mrb[24].mxu0 %vm206_vm1, %v2609_v26 }
0x3a9d   :  { %3736 = vmatpush3.bf16.msra.mxu0 %v4474_v41  ;;  %3562 = vmatprep.mubr.msk.f32.mxu0 %vm4111_vm0, %v4112_v12 }
0x3a9e   :  { %3737 = vmatprep.subr.bf16.mxu0 %v4110_v9 }
0x3aa1   :  { %3739 = vmatpush3.bf16.msra.mxu0 %v4477_v45 }
0x3b6f   :  { %v2681_v28 = vpop.f32.mrb[24].mxu0 }
0x3b70   :  { %v2685_v29 = vadd.f32 %v2681_v28, %v2612_v27  ;;  %v3542_v31 = vpop.f32.mrb[25].mxu0 }
0x3b72   :  { %3935 = vtanh.f32 %v2685_v29  ;;  %v3122_v33 = vmul.f32 -1.442695, %v2685_v29 }
0x3b74   :  { %3937 = vpow2.f32 %v3122_v33 }
0x3b7c   :  { %v3936_v32 = vpop.eup %3935 }
0x3b7d   :  { %2695 = vrot.lane.b32.xlu1 %v3936_v32, %s4113_s30 }
0x3b7e   :  { %v3938_v34 = vpop.eup %3937 }
0x3b7f   :  { %v2689_v35 = vadd.f32 1.0, %v3938_v34 }
0x3b81   :  { %3939 = vrcp.f32 %v2689_v35 }
0x3b8b   :  { %v3940_v41 = vpop.eup %3939 }
0x3b8c   :  { %v2693_v9 = vmul.f32 %v3940_v41, %v2600_v22 }
0x3bef   :  { %v2696_v36 = vpop.permute.xlu1 %2695 }
0x3bf0   :  { %v2698_v12 = vmul.f32 %v3940_v41, %v2696_v36 }
0x3bf2   :  { %2700 = vrot.lane.b32.xlu0 %v2698_v12, %s4114_s21 }
0x3c64   :  { %v2701_v45 = vpop.permute.xlu0 %2700 }
0x3c65   :  { %v2703_v37 = vadd.f32 %v2701_v45, %v2693_v9 }
0x3c67   :  { %3941 = vtanh.f32 %v2703_v37 }
0x3c71   :  { %v3942_v38 = vpop.eup %3941 }
0x3c72   :  { %2706 = vrot.lane.b32.xlu1 %v3942_v38, %s4113_s30 }
0x3ce4   :  { %v2707_v39 = vpop.permute.xlu1 %2706 }
0x3ce5   :  { %v2709_v40 = vmul.f32 %v3940_v41, %v2707_v39 }
0x3ce7   :  { %2711 = vrot.lane.b32.xlu0 %v2709_v40, %s4114_s21 }
0x3d59   :  { %v2712_v42 = vpop.permute.xlu0 %2711 }
0x3d5a   :  { %2714 = vst.msk [vmem:[#allocation2 + $0xa] sm:$0x3] %vm313_vm5, %v2712_v42  ;;  %3552 = vmatmul.mubr.msk.f32.vlgmr.msra.gmra.mrb[24].mxu1 %vm206_vm1, %v2712_v42 }
0x3d5b   :  { %3573 = vmatprep.mubr.msk.f32.mxu1 %vm206_vm1, %v2929_v43  ;;  %3743 = vmatpush3.bf16.msra.mxu1 %v3740_v19 }
0x3e2d   :  { %v2784_v47 = vpop.f32.mrb[24].mxu1 }
0x3e2e   :  { %v2788_v57 = vadd.f32 %v2784_v47, %v2715_v44  ;;  %v3553_v48 = vpop.f32.mrb[25].mxu1 }
0x3e30   :  { %3943 = vtanh.f32 %v2788_v57  ;;  %v3124_v50 = vmul.f32 -1.442695, %v2788_v57 }
0x3e32   :  { %3945 = vpow2.f32 %v3124_v50 }
0x3e3a   :  { %v3944_v49 = vpop.eup %3943 }
0x3e3b   :  { %2798 = vrot.lane.b32.xlu1 %v3944_v49, %s4113_s30 }
0x3e3c   :  { %v3946_v51 = vpop.eup %3945 }
0x3e3d   :  { %v2792_v61 = vadd.f32 1.0, %v3946_v51 }
0x3e3f   :  { %3947 = vrcp.f32 %v2792_v61 }
0x3e49   :  { %v3948_v52 = vpop.eup %3947 }
0x3e4a   :  { %v2796_v55 = vmul.f32 %v3948_v52, %v2703_v37 }
0x3ead   :  { %v2799_v53 = vpop.permute.xlu1 %2798 }
0x3eae   :  { %v2801_v54 = vmul.f32 %v3948_v52, %v2799_v53 }
0x3eb0   :  { %2803 = vrot.lane.b32.xlu0 %v2801_v54, %s4114_s21 }
0x3f22   :  { %v2804_v56 = vpop.permute.xlu0 %2803 }
0x3f23   :  { %v2806_v58 = vadd.f32 %v2804_v56, %v2796_v55 }
0x3f25   :  { %3949 = vtanh.f32 %v2806_v58 }
0x3f2f   :  { %v3950_v59 = vpop.eup %3949 }
0x3f30   :  { %2809 = vrot.lane.b32.xlu1 %v3950_v59, %s4113_s30 }
0x3fa2   :  { %v2810_v60 = vpop.permute.xlu1 %2809 }
0x3fa3   :  { %v2812_v62 = vmul.f32 %v3948_v52, %v2810_v60 }
0x3fa5   :  { %2814 = vrot.lane.b32.xlu0 %v2812_v62, %s4114_s21 }
0x4017   :  { %v2815_v63 = vpop.permute.xlu0 %2814 }
0x4018   :  { %2817 = vst.msk [vmem:[#allocation2 + $0xc] sm:$0x3] %vm313_vm5, %v2815_v63  ;;  %3563 = vmatmul.mubr.msk.f32.vlgmr.msra.gmra.mrb[26].mxu0 %vm206_vm1, %v2815_v63 }
0x40eb   :  { %v2887_v0 = vpop.f32.mrb[26].mxu0 }
0x40ec   :  { %v2891_v1 = vadd.f32 %v2887_v0, %v2818_v10  ;;  %v3564_v2 = vpop.f32.mrb[27].mxu0 }
0x40ee   :  { %3951 = vtanh.f32 %v2891_v1  ;;  %v3126_v13 = vmul.f32 -1.442695, %v2891_v1 }
0x40f0   :  { %3953 = vpow2.f32 %v3126_v13 }
0x40f8   :  { %v3952_v3 = vpop.eup %3951 }
0x40f9   :  { %2901 = vrot.lane.b32.xlu1 %v3952_v3, %s4113_s30 }
0x40fa   :  { %v3954_v4 = vpop.eup %3953 }
0x40fb   :  { %v2895_v5 = vadd.f32 1.0, %v3954_v4 }
0x40fd   :  { %3955 = vrcp.f32 %v2895_v5 }
0x4107   :  { %v3956_v6 = vpop.eup %3955 }
0x4108   :  { %v2899_v11 = vmul.f32 %v3956_v6, %v2806_v58 }
0x416b   :  { %v2902_v7 = vpop.permute.xlu1 %2901 }
0x416c   :  { %v2904_v8 = vmul.f32 %v3956_v6, %v2902_v7 }
0x416e   :  { %2906 = vrot.lane.b32.xlu0 %v2904_v8, %s4114_s21 }
0x41e0   :  { %v2907_v14 = vpop.permute.xlu0 %2906 }
0x41e1   :  { %v2909_v15 = vadd.f32 %v2907_v14, %v2899_v11 }
0x41e3   :  { %3957 = vtanh.f32 %v2909_v15 }
0x41ed   :  { %v3958_v16 = vpop.eup %3957 }
0x41ee   :  { %2912 = vrot.lane.b32.xlu1 %v3958_v16, %s4113_s30 }
0x41f2   :  { %1038 = vrot.lane.b32.xlu1 %v4356_v46, %s4115_s7  ;;  %v2934_v46 = vld [vmem:[%s4640_s5 + $0x18] sm:$0xff]  ;;  %s4116_s5 = smov [#allocation12]  }
0x41f3   :  { %v3744_v21 = vpack.c.bf16 %v2934_v46, %v2933_v20  ;;  %s3032_s2 = sshll.u32 %s4116_s5, 4  ;;  %s3033_s2 = int_to_ptr.vmem [resolvable:$true] %s3032_s2 }
0x41f4   :  { %s4047_s29 = scalar_lea.vmem %s3033_s2, 96  ;;  %p4052_p5 = scmp.lt.s32.totalorder %s3033_s2, %s3033_s2 }
0x41f5   :  { %3745 = vmatprep.subr.bf16.mxu1 %v3744_v21  ;;  %p4048_p4 = scmp.ne.s32.totalorder %s3033_s2, %s4047_s29  ;;  %p4053_p6 = scmp.lt.s32.totalorder %s4047_s29, %s4047_s29 }
0x41f6   :  { %2924 = vrot.lane.b32.xlu1 %v2909_v15, %s4115_s7  ;;  %3747 = vmatpush3.bf16.msra.mxu1 %v3744_v21 }
0x41f7   :  { %p4054_p7 = por %p4053_p6, %p4052_p5 }
0x41f9   :  { %p4055_p8 = pnand %p4054_p7, %p4048_p4 }
0x4260   :  { %v2913_v22 = vpop.permute.xlu1 %2912 }
0x4261   :  { %v2915_v23 = vmul.f32 %v3956_v6, %v2913_v22 }
0x4263   :  { %2917 = vrot.lane.b32.xlu0 %v2915_v23, %s4114_s21 }
0x4264   :  { %v1039_v24 = vpop.permute.xlu1 %1038 }
0x4265   :  { %1041 = vst.msk [vmem:[#allocation13] sm:$0x3] %vm313_vm5, %v1039_v24 }
0x4267   :  { %1980 = vrot.lane.b32.xlu0 %v4469_v30, %s4115_s7 }
0x4268   :  { %v2925_v25 = vpop.permute.xlu1 %2924 }
0x4269   :  { %2928 = vst.msk [vmem:[#allocation13 + $0x4] sm:$0x3] %vm313_vm5, %v2925_v25 }
0x42d5   :  { %v2918_v26 = vpop.permute.xlu0 %2917 }
0x42d6   :  { %2920 = vst.msk [vmem:[#allocation2 + $0xe] sm:$0x3] %vm313_vm5, %v2918_v26  ;;  %2922 = vst.msk [vmem:[#allocation12 + $0x4] sm:$0x3] %vm313_vm5, %v2918_v26 }
0x42d9   :  { %v1981_v27 = vpop.permute.xlu0 %1980 }
0x42da   :  { %1984 = vst.msk [vmem:[#allocation13 + $0x2] sm:$0x3] %vm313_vm5, %v1981_v27 }
0x42dd   :  { %v2930_v28 = vld [vmem:[#allocation2 + $0x8] sm:$0xff] }
0x42de   :  { %3574 = vmatmul.mubr.msk.f32.vlgmr.msra.gmra.mrb[26].mxu1 %vm206_vm1, %v2930_v28 }
0x42df   :  { %4058 = shalt.err (!%p4055_p8)
}
0x42e0   :  { %s4059_s30 = scalar_lea.hbm %s4645_s10, 96 }
0x42e1   :  { %p4060_p9 = scmp.ne.s32.totalorder %s4645_s10, %s4059_s30  ;;  %p4063_p10 = scmp.lt.u32.totalorder %s4059_s30, %s4645_s10 }
0x42e3   :  { %p4065_p11 = pnand %p4063_p10, %p4060_p9 }
0x42e5   :  { %4068 = shalt.err (!%p4065_p11)
}
0x42e6   :  { %s4118_s3 = smov 2   ;;  %s4069_s26 = scalar_lea.vmem %s3045_s6, 96 }
0x42e7   :  { %3038 = dma.vmem_to_hbm [thread:$0]  %s3033_s2, 96, %s4645_s10, [#allocation6], %s4114_s21, %s4114_s21, %s4118_s3  }
0x42e8   :  { %p4070_p12 = scmp.ne.s32.totalorder %s3045_s6, %s4069_s26  ;;  %p4074_p13 = scmp.lt.s32.totalorder %s3045_s6, %s3045_s6 }
0x42e9   :  { %p4075_p0 = scmp.lt.s32.totalorder %s4069_s26, %s4069_s26 }
0x42eb   :  { %p4076_p1 = por %p4075_p0, %p4074_p13 }
0x42ed   :  { %p4077_p2 = pnand %p4076_p1, %p4070_p12 }
0x42ef   :  { %4080 = shalt.err (!%p4077_p2)
}
0x42f0   :  { %s4081_s7 = scalar_lea.hbm %s4646_s11, 96 }
0x42f1   :  { %p4082_p3 = scmp.ne.s32.totalorder %s4646_s11, %s4081_s7  ;;  %p4085_p4 = scmp.lt.u32.totalorder %s4081_s7, %s4646_s11 }
0x42f3   :  { %p4087_p5 = pnand %p4085_p4, %p4082_p3 }
0x42f5   :  { %4090 = shalt.err (!%p4087_p5)
}
0x42f6   :  { %3050 = dma.vmem_to_hbm [thread:$0]  %s3045_s6, 96, %s4646_s11, [#allocation14], %s4114_s21, %s4114_s21, %s4118_s3   ;;  %v3127_v30 = vld [vmem:[#allocation10] ss:$0 sm:$0xff] }
0x43b1   :  { %v3575_v29 = vpop.f32.mrb[26].mxu1 }
0x43b2   :  { %v3020_v31 = vadd.f32 %v3575_v29, %v3127_v30  ;;  %v3014_v32 = vpop.f32.mrb[27].mxu1 }
0x43b3   :  { %v3015_v33 = vadd.f32 %v3127_v30, %v3014_v32 }
0x43b4   :  { %3024 = vst [vmem:[%s4644_s9 + $0x8] sm:$0xff] %v3020_v31 }
0x43b5   :  { %3023 = vst [vmem:[%s4644_s9] sm:$0xff] %v3015_v33 }
0x43b6   :  { %4097 = dma.done.wait [#allocation6], 96  }
0x43b7   :  { %4098 = vsyncadd [#allocation6], 4294967200 }
0x43b8   :  { %4099 = dma.done.wait [#allocation14], 96  }
0x43b9   :  { %4100 = vsyncadd [#allocation14], 4294967200 }
0x43ba   :  { %3059 = vsyncpa [#allocation5], 1 }
0x43bb   :  { %3060 = vsyncpa [#allocation8], 1 }
0x43bc   :  { %3061 = vsyncpa [#allocation11], 1 }
0x43bd   :  { %3062 = vsyncpa [#allocation6], 1 }
0x43be   :  { %3063 = vsyncpa [#allocation14], 1 }

</bundles_post_ra>
